<compile_context>
chip_gen: v5e
topology: v5e:2x2
jax: 0.10.0
libtpu: 0.0.40
codegen_flags: <defaults>
</compile_context>

<pallas_src>
import functools

import jax
import jax.numpy as jnp
from jax.experimental import pallas as pl
from jax.experimental.pallas import tpu as pltpu  # noqa: F401  (TPU backend assumed)

LEAK = 0.2
EPS = 1e-5

C_REAL = 77          # conv / bn / attention channel count in the torch module
C_PAD = 128          # lane-padded channel count used for h1 / attention
C_LIN = 80           # de-padded, sublane-aligned per-position rows for linear1
N_POS = 3            # spatial positions after h1_prev (H: 16 -> 8 -> 3)
D_ATT = C_REAL // 8  # 9, query/key dim of Self_Attn
FC = 1024            # dfc_dim


def _leaky(x):
    # F.leaky_relu(x, 0.2)
    return jnp.where(x >= 0, x, LEAK * x)


# ---------------------------------------------------------------------------
# Single fused kernel (no grid; everything VMEM-resident)
# ---------------------------------------------------------------------------
def make_fused_kernel(B, attention):
    N, Cp, CL = N_POS, C_PAD, C_LIN
    inv_cnt1 = 1.0 / (N * B)

    def kernel(x_ref, w0_ref, b0_ref, w1_ref, b1_ref, g1_ref, be1_ref,
               m_ref, u_ref, wv_ref, bv_ref, gm_ref,
               wl1_ref, bl1_ref, g2_ref, be2_ref, wl2_ref, bl2_ref,
               out_ref):
        # ---- h0 = leaky(h0_prev(x)) as a window reduce (VPU + XLU, no MXU) --
        # x_ref: (B, 8, 2W), w0_ref: (1, 2W) broadcast over (B, 8, 2W).
        h0 = _leaky(jnp.sum(x_ref[...] * w0_ref[...], axis=-1)
                    + b0_ref[...])                              # (B, 8)

        # ---- h1_prev conv as one (B,8) @ (8, N*Cp) matmul (bf16 weights) ----
        w1 = w1_ref[...].astype(jnp.float32)
        h1_all = jnp.dot(h0, w1, preferred_element_type=jnp.float32)
        h1 = [h1_all[:, n * Cp:(n + 1) * Cp] + b1_ref[...] for n in range(N)]

        # ---- bn1: per-channel batch stats over the B*N rows -----------------
        m1 = sum(jnp.sum(h, axis=0, keepdims=True) for h in h1) * inv_cnt1
        v1 = sum(jnp.sum((h - m1) ** 2, axis=0, keepdims=True)
                 for h in h1) * inv_cnt1
        inv_std1 = jax.lax.rsqrt(v1 + EPS)
        h1 = [g1_ref[...] * (h - m1) * inv_std1 + be1_ref[...] for h in h1]
        # (padded channels 77..127 are exactly zero: g1/be1/W1/b1 are zero there)

        # ---- Self_Attn(77): q/k folded into M, unrolled over N=3 positions --
        if attention:
            m_w = m_ref[...].astype(jnp.float32)
            wv = wv_ref[...].astype(jnp.float32)
            # hm_i = h_i @ (Wq Wk^T) + bq Wk^T;  score_ij ~ lane_reduce(hm_i*h_j)
            # (terms independent of j drop out of the softmax over j).
            hm = [jnp.dot(h, m_w, preferred_element_type=jnp.float32)
                  + u_ref[...] for h in h1]                     # (B, Cp)
            vv = [jnp.dot(h, wv, preferred_element_type=jnp.float32)
                  + bv_ref[...] for h in h1]                    # (B, Cp)
            gm = gm_ref[...]                                    # (1, 1)
            att = []
            for i in range(N):
                s = [jnp.sum(hm[i] * h1[j], axis=-1, keepdims=True)
                     for j in range(N)]                         # (B, 1) each
                smax = s[0]
                for j in range(1, N):
                    smax = jnp.maximum(smax, s[j])
                e = [jnp.exp(sj - smax) for sj in s]
                denom = e[0]
                for j in range(1, N):
                    denom = denom + e[j]
                inv = pl.reciprocal(denom, approx=True)         # EUP slot
                o = (e[0] * inv) * vv[0]
                for j in range(1, N):
                    o = o + (e[j] * inv) * vv[j]
                att.append(o)                                   # (B, Cp)
            h1 = [gm * att[n] + h1[n] for n in range(N)]

        # ---- leaky -> linear1 on de-padded 80-row weight blocks (bf16) ------
        z1 = bl1_ref[...]                                       # (1, 1024)
        for n in range(N):
            lhs = _leaky(h1[n])[:, :CL]                         # (B, 80)
            rhs = wl1_ref[n * CL:(n + 1) * CL, :].astype(jnp.float32)
            z1 = z1 + jnp.dot(lhs, rhs,
                              preferred_element_type=jnp.float32)  # (B, 1024)

        # ---- bn2 (batch stats over B rows) + leaky ---------------------------
        m2 = jnp.mean(z1, axis=0, keepdims=True)
        v2 = jnp.mean((z1 - m2) ** 2, axis=0, keepdims=True)
        h2 = _leaky(g2_ref[...] * (z1 - m2) * jax.lax.rsqrt(v2 + EPS)
                    + be2_ref[...])                             # (B, 1024)

        # ---- linear2 as a lane reduction (avoids an N=1 MXU matmul) ----------
        h3 = jnp.sum(h2 * wl2_ref[...], axis=-1, keepdims=True) + bl2_ref[...]
        sig = jax.nn.sigmoid(h3)

        # ---- single merged output: [sigmoid | h3 | h0 | zeros] -> (B, 16) ----
        out_ref[:, 0:1] = sig
        out_ref[:, 1:2] = h3
        out_ref[:, 2:10] = h0
        out_ref[:, 10:16] = jnp.zeros((B, 6), jnp.float32)

    return kernel


# ---------------------------------------------------------------------------
# Wrapper
# ---------------------------------------------------------------------------
@functools.partial(jax.jit, static_argnames=("attention",))
def discriminator_forward(x, packed, attention=True):
    B, Cin, H, W = x.shape             # NCHW, Cin = 1, H = 16, W = pitch_range
    assert Cin == 1 and H == 16
    x3 = x.reshape(B, 8, 2 * W)        # contiguous -> free reshape (windows)

    args = (x3, packed["w0"], packed["b0"], packed["W1"], packed["b1"],
            packed["g1"], packed["be1"], packed["M"], packed["u"],
            packed["wv"], packed["bv"], packed["gm"],
            packed["WL1"], packed["bl1"], packed["g2"], packed["be2"],
            packed["wl2"], packed["bl2"])

    # Advisory cost estimate so XLA can overlap neighbours with this tiny call.
    bytes_accessed = int(sum(int(a.size) * a.dtype.itemsize for a in args)
                         + B * 16 * 4)
    flops = int(2 * B * (8 * 2 * W + 8 * N_POS * C_PAD
                         + (2 * N_POS * C_PAD * C_PAD
                            + 2 * N_POS * N_POS * C_PAD if attention else 0)
                         + N_POS * C_LIN * FC + FC)
                + 8 * B * (N_POS * C_PAD + FC))
    transcendentals = int(B * (N_POS * N_POS + N_POS + 2) + C_PAD + FC)

    out = pl.pallas_call(
        make_fused_kernel(B, attention),
        out_shape=jax.ShapeDtypeStruct((B, 16), jnp.float32),
        cost_estimate=pl.CostEstimate(flops=flops,
                                      transcendentals=transcendentals,
                                      bytes_accessed=bytes_accessed),
    )(*args)

    h3_sigmoid = out[:, 0:1]
    h3 = out[:, 1:2]
    h0 = out[:, 2:10].reshape(B, 1, H // 2, 1)   # back to NCHW (B,1,8,1)
    return h3_sigmoid, h3, h0


# ---------------------------------------------------------------------------
# Deterministic parameter init (torch-equivalent shapes from the module)
# ---------------------------------------------------------------------------
def init_params(key, pitch_range):
    ks = jax.random.split(key, 18)

    def nrm(k, shape, scale=0.05):
        return scale * jax.random.normal(k, shape, dtype=jnp.float32)

    p = {}
    # h0_prev: Conv2d(1, 1, (2, pitch_range)) -> weight (1,1,2,pr) flat (2*pr, 1)
    p["w0"] = nrm(ks[0], (2 * pitch_range, 1))
    p["b0"] = nrm(ks[1], (1, 1))
    # h1_prev: Conv2d(1, 77, (4, 1)) -> weight (77,1,4,1) stored as (4, 77)
    p["w1"] = nrm(ks[2], (4, 77))
    p["b1"] = nrm(ks[3], (1, 77))
    # bn1: BatchNorm2d(77)
    p["bn1_g"] = 1.0 + nrm(ks[4], (1, 77))
    p["bn1_b"] = nrm(ks[5], (1, 77))
    # attn2: Self_Attn(77): 1x1 convs as (in, out) matrices
    p["wq"] = nrm(ks[6], (77, 9))
    p["bq"] = nrm(ks[7], (1, 9))
    p["wk"] = nrm(ks[8], (77, 9))
    p["bk"] = nrm(ks[9], (1, 9))
    p["wv"] = nrm(ks[10], (77, 77))
    p["bv"] = nrm(ks[11], (1, 77))
    # Module __init__ sets gamma = 0; nonzero here only to exercise attention.
    p["attn_gamma"] = jnp.full((1, 1), 0.1, dtype=jnp.float32)
    # linear1: Linear(231, 1024) stored as (in, out), torch flatten order f=c*3+n
    p["wl1"] = nrm(ks[12], (231, 1024))
    p["bl1"] = nrm(ks[13], (1, 1024))
    # bn2: BatchNorm1d(1024)
    p["bn2_g"] = 1.0 + nrm(ks[14], (1, 1024))
    p["bn2_b"] = nrm(ks[15], (1, 1024))
    # linear2: Linear(1024, 1)
    p["wl2"] = nrm(ks[16], (1024, 1))
    p["bl2"] = nrm(ks[17], (1, 1))
    return p


# ---------------------------------------------------------------------------
# One-time host-side packing: fold convs, fold attention q/k, de-pad linear1,
# store the large weights in bf16 (biases / BN params stay f32).
# ---------------------------------------------------------------------------
def pack_params(params, pitch_range):
    W = pitch_range
    f32, bf16 = jnp.float32, jnp.bfloat16
    C, Cp, CL, N, D = C_REAL, C_PAD, C_LIN, N_POS, D_ATT

    # h0_prev: raw (1, 2W) filter; conv is a window reduce in-kernel (no block
    # matrix, no MXU).  1 KB -> stays f32.
    w0 = params["w0"].reshape(1, 2 * W).astype(f32)
    b0 = params["b0"]

    # h1_prev conv -> (8, N*Cp) block matrix: position n reads h0 rows 2n..2n+3.
    W1 = jnp.zeros((8, N * Cp), f32)
    for n in range(N):
        W1 = W1.at[2 * n:2 * n + 4, n * Cp:n * Cp + C].set(params["w1"])
    W1 = W1.astype(bf16)

    def padlane(a, width):
        return jnp.zeros((a.shape[0], width), f32).at[:, :a.shape[1]].set(a)

    b1 = padlane(params["b1"], Cp)
    g1 = padlane(params["bn1_g"], Cp)    # padded channels stay exactly 0 thru BN
    be1 = padlane(params["bn1_b"], Cp)

    # Attention: fold q/k projections.  M = Wq Wk^T, u = bq Wk^T (the only
    # bias term that depends on j; j-independent terms drop out of softmax).
    wq = jnp.zeros((Cp, D), f32).at[:C, :].set(params["wq"])
    wk = jnp.zeros((Cp, D), f32).at[:C, :].set(params["wk"])
    M = jnp.dot(wq, wk.T).astype(bf16)                   # (Cp, Cp)
    u = jnp.dot(params["bq"], wk.T).astype(f32)          # (1, Cp)
    wv = jnp.zeros((Cp, Cp), f32).at[:C, :C].set(params["wv"]).astype(bf16)
    bv = padlane(params["bv"], Cp)

    # linear1: torch flattens NCHW channel-major (f = c*3 + n); permute rows to
    # position-major and pack each position block to CL=80 rows (rows 77..79
    # are zero) so no 77->128 zero padding is shipped to HBM.
    WL1 = jnp.zeros((N * CL, FC), f32)
    for n in range(N):
        WL1 = WL1.at[n * CL:n * CL + C, :].set(params["wl1"][n::N, :])
    WL1 = WL1.astype(bf16)

    return dict(w0=w0, b0=b0, W1=W1, b1=b1, g1=g1, be1=be1,
                M=M, u=u, wv=wv, bv=bv, gm=params["attn_gamma"],
                WL1=WL1, bl1=params["bl1"], g2=params["bn2_g"],
                be2=params["bn2_b"], wl2=params["wl2"].reshape(1, FC),
                bl2=params["bl2"])


# ---------------------------------------------------------------------------
# Pure-JAX reference (mirrors the torch forward) for numerical checking
# ---------------------------------------------------------------------------
def reference_forward(x, params, attention=True):
    B, _, H, W = x.shape
    # h0 = leaky(h0_prev(x))
    xwin = x.reshape(B, 8, 2 * W)
    h0 = jnp.sum(xwin * params["w0"].reshape(1, 1, 2 * W), axis=-1) \
        + params["b0"][0, 0]
    h0 = jnp.where(h0 >= 0, h0, LEAK * h0)                     # (B, 8)
    # h1 = bn1(h1_prev(h0))      (B, N, C) position-major == torch (B, C, N).T
    h1 = jnp.stack([h0[:, 2 * n:2 * n + 4] @ params["w1"] for n in range(3)],
                   axis=1) + params["b1"][None]
    m = jnp.mean(h1, axis=(0, 1), keepdims=True)
    v = jnp.mean((h1 - m) ** 2, axis=(0, 1), keepdims=True)
    h1 = params["bn1_g"][None] * (h1 - m) * jax.lax.rsqrt(v + EPS) \
        + params["bn1_b"][None]
    if attention:
        q = h1 @ params["wq"] + params["bq"][None]
        k = h1 @ params["wk"] + params["bk"][None]
        vv = h1 @ params["wv"] + params["bv"][None]
        a = jax.nn.softmax(jnp.einsum("bid,bjd->bij", q, k), axis=-1)
        o = jnp.einsum("bij,bjc->bic", a, vv)
        h1 = params["attn_gamma"][0, 0] * o + h1
    h1 = jnp.where(h1 >= 0, h1, LEAK * h1)
    h1f = jnp.transpose(h1, (0, 2, 1)).reshape(B, 231)         # torch view(B,-1)
    z1 = h1f @ params["wl1"] + params["bl1"]
    m2 = jnp.mean(z1, axis=0, keepdims=True)
    v2 = jnp.mean((z1 - m2) ** 2, axis=0, keepdims=True)
    h2 = params["bn2_g"] * (z1 - m2) * jax.lax.rsqrt(v2 + EPS) + params["bn2_b"]
    h2 = jnp.where(h2 >= 0, h2, LEAK * h2)
    h3 = h2 @ params["wl2"] + params["bl2"]
    return jax.nn.sigmoid(h3), h3, h0.reshape(B, 1, 8, 1)


if __name__ == "__main__":
    key = jax.random.PRNGKey(0)
    kx, kp = jax.random.split(key)

    pitch_range = 128
    params = init_params(kp, pitch_range)
    packed = pack_params(params, pitch_range)

    # --- primary run: batch_size = 2 -----------------------------------------
    batch_size = 2
    x = jax.random.normal(kx, (batch_size, 1, 16, pitch_range), dtype=jnp.float32)
    h3_sigmoid, h3, h0 = discriminator_forward(x, packed, attention=True)
    jax.block_until_ready((h3_sigmoid, h3, h0))

    assert h3_sigmoid.shape == (batch_size, 1)
    assert h3.shape == (batch_size, 1)
    assert h0.shape == (batch_size, 1, 8, 1)
    assert bool(jnp.all(jnp.isfinite(h3_sigmoid)))
    assert bool(jnp.all((h3_sigmoid >= 0.0) & (h3_sigmoid <= 1.0)))

    # h0 path check (window-reduce conv + leaky, directly comparable).
    _, _, h0_ref = reference_forward(x, params, attention=True)
    assert float(jnp.max(jnp.abs(h0 - h0_ref))) < 2e-2

    # --- end-to-end numerical check at batch_size = 4 -------------------------
    # (BatchNorm1d at B=2 collapses normalized values to +-1, making the output
    #  discontinuously sensitive; B=4 gives a smooth comparison.  Tolerance
    #  accounts for bf16 weight storage + approx softmax reciprocal.)
    xb4 = jax.random.normal(jax.random.PRNGKey(1), (4, 1, 16, pitch_range),
                            dtype=jnp.float32)
    sig4, h34, h04 = discriminator_forward(xb4, packed, attention=True)
    rsig4, rh34, rh04 = reference_forward(xb4, params, attention=True)
    jax.block_until_ready((sig4, rsig4))
    assert float(jnp.max(jnp.abs(h04 - rh04))) < 2e-2
    assert float(jnp.max(jnp.abs(sig4 - rsig4))) < 8e-2

    print("KERNEL_OK")
</pallas_src>

<mosaic_0001>
module attributes {stable_mosaic.version = 11 : i64} {
  func.func @kernel(%arg0: memref<2x8x256xf32, #tpu.memory_space<vmem>>, %arg1: memref<1x256xf32, #tpu.memory_space<vmem>>, %arg2: memref<1x1xf32, #tpu.memory_space<vmem>>, %arg3: memref<8x384xbf16, #tpu.memory_space<vmem>>, %arg4: memref<1x128xf32, #tpu.memory_space<vmem>>, %arg5: memref<1x128xf32, #tpu.memory_space<vmem>>, %arg6: memref<1x128xf32, #tpu.memory_space<vmem>>, %arg7: memref<128x128xbf16, #tpu.memory_space<vmem>>, %arg8: memref<1x128xf32, #tpu.memory_space<vmem>>, %arg9: memref<128x128xbf16, #tpu.memory_space<vmem>>, %arg10: memref<1x128xf32, #tpu.memory_space<vmem>>, %arg11: memref<1x1xf32, #tpu.memory_space<vmem>>, %arg12: memref<240x1024xbf16, #tpu.memory_space<vmem>>, %arg13: memref<1x1024xf32, #tpu.memory_space<vmem>>, %arg14: memref<1x1024xf32, #tpu.memory_space<vmem>>, %arg15: memref<1x1024xf32, #tpu.memory_space<vmem>>, %arg16: memref<1x1024xf32, #tpu.memory_space<vmem>>, %arg17: memref<1x1xf32, #tpu.memory_space<vmem>>, %arg18: memref<2x16xf32, #tpu.memory_space<vmem>>) attributes {dimension_semantics = [], scalar_prefetch = 0 : i64, scratch_operands = 0 : i64, tpu.core_type = #tpu.core_type<tc>} {
    %c0 = arith.constant 0 : index
    %c0_0 = arith.constant 0 : index
    %c0_1 = arith.constant 0 : index
    %0 = vector.load %arg0[%c0, %c0_0, %c0_1] : memref<2x8x256xf32, #tpu.memory_space<vmem>>, vector<2x8x256xf32>
    %c0_2 = arith.constant 0 : index
    %c0_3 = arith.constant 0 : index
    %1 = vector.load %arg1[%c0_2, %c0_3] : memref<1x256xf32, #tpu.memory_space<vmem>>, vector<1x256xf32>
    %2 = vector.shape_cast %1 : vector<1x256xf32> to vector<1x1x256xf32>
    %3 = vector.broadcast %2 : vector<1x1x256xf32> to vector<2x8x256xf32>
    %4 = arith.mulf %0, %3 : vector<2x8x256xf32>
    %cst = arith.constant dense<0.000000e+00> : vector<2x8xf32>
    %5 = vector.multi_reduction <add>, %4, %cst [2] : vector<2x8x256xf32> to vector<2x8xf32>
    %c0_4 = arith.constant 0 : index
    %c0_5 = arith.constant 0 : index
    %6 = vector.load %arg2[%c0_4, %c0_5] : memref<1x1xf32, #tpu.memory_space<vmem>>, vector<1x1xf32>
    %7 = vector.broadcast %6 : vector<1x1xf32> to vector<2x8xf32>
    %8 = arith.addf %5, %7 : vector<2x8xf32>
    %cst_6 = arith.constant 0.000000e+00 : f32
    %9 = vector.broadcast %cst_6 : f32 to vector<2x8xf32>
    %10 = arith.cmpf oge, %8, %9 : vector<2x8xf32>
    %cst_7 = arith.constant 2.000000e-01 : f32
    %11 = vector.broadcast %cst_7 : f32 to vector<2x8xf32>
    %12 = arith.mulf %11, %8 : vector<2x8xf32>
    %13 = arith.select %10, %8, %12 : vector<2x8xi1>, vector<2x8xf32>
    %c0_8 = arith.constant 0 : index
    %c0_9 = arith.constant 0 : index
    %14 = vector.load %arg3[%c0_8, %c0_9] : memref<8x384xbf16, #tpu.memory_space<vmem>>, vector<8x384xbf16>
    %15 = arith.extf %14 : vector<8x384xbf16> to vector<8x384xf32>
    %cst_10 = arith.constant dense<0.000000e+00> : vector<2x384xf32>
    %16 = tpu.matmul %13, %15, %cst_10 {dimension_numbers = #tpu.dot_dimension_numbers<[1], [0], [0], [1], [0, 0, 1, 1], [], []>} : vector<2x8xf32>, vector<8x384xf32>, vector<2x384xf32> -> vector<2x384xf32>
    %17 = vector.extract_strided_slice %16 {offsets = [0, 0], sizes = [2, 128], strides = [1, 1]} : vector<2x384xf32> to vector<2x128xf32>
    %c0_11 = arith.constant 0 : index
    %c0_12 = arith.constant 0 : index
    %18 = vector.load %arg4[%c0_11, %c0_12] : memref<1x128xf32, #tpu.memory_space<vmem>>, vector<1x128xf32>
    %19 = vector.broadcast %18 : vector<1x128xf32> to vector<2x128xf32>
    %20 = arith.addf %17, %19 : vector<2x128xf32>
    %21 = vector.extract_strided_slice %16 {offsets = [0, 128], sizes = [2, 128], strides = [1, 1]} : vector<2x384xf32> to vector<2x128xf32>
    %c0_13 = arith.constant 0 : index
    %c0_14 = arith.constant 0 : index
    %22 = vector.load %arg4[%c0_13, %c0_14] : memref<1x128xf32, #tpu.memory_space<vmem>>, vector<1x128xf32>
    %23 = vector.broadcast %22 : vector<1x128xf32> to vector<2x128xf32>
    %24 = arith.addf %21, %23 : vector<2x128xf32>
    %25 = vector.extract_strided_slice %16 {offsets = [0, 256], sizes = [2, 128], strides = [1, 1]} : vector<2x384xf32> to vector<2x128xf32>
    %c0_15 = arith.constant 0 : index
    %c0_16 = arith.constant 0 : index
    %26 = vector.load %arg4[%c0_15, %c0_16] : memref<1x128xf32, #tpu.memory_space<vmem>>, vector<1x128xf32>
    %27 = vector.broadcast %26 : vector<1x128xf32> to vector<2x128xf32>
    %28 = arith.addf %25, %27 : vector<2x128xf32>
    %cst_17 = arith.constant dense<0.000000e+00> : vector<128xf32>
    %29 = vector.multi_reduction <add>, %20, %cst_17 [0] : vector<2x128xf32> to vector<128xf32>
    %30 = vector.shape_cast %29 : vector<128xf32> to vector<1x128xf32>
    %cst_18 = arith.constant 0.000000e+00 : f32
    %31 = vector.broadcast %cst_18 : f32 to vector<1x128xf32>
    %32 = arith.addf %31, %30 : vector<1x128xf32>
    %cst_19 = arith.constant dense<0.000000e+00> : vector<128xf32>
    %33 = vector.multi_reduction <add>, %24, %cst_19 [0] : vector<2x128xf32> to vector<128xf32>
    %34 = vector.shape_cast %33 : vector<128xf32> to vector<1x128xf32>
    %35 = arith.addf %32, %34 : vector<1x128xf32>
    %cst_20 = arith.constant dense<0.000000e+00> : vector<128xf32>
    %36 = vector.multi_reduction <add>, %28, %cst_20 [0] : vector<2x128xf32> to vector<128xf32>
    %37 = vector.shape_cast %36 : vector<128xf32> to vector<1x128xf32>
    %38 = arith.addf %35, %37 : vector<1x128xf32>
    %cst_21 = arith.constant 0.166666672 : f32
    %39 = vector.broadcast %cst_21 : f32 to vector<1x128xf32>
    %40 = arith.mulf %38, %39 : vector<1x128xf32>
    %41 = vector.broadcast %40 : vector<1x128xf32> to vector<2x128xf32>
    %42 = arith.subf %20, %41 : vector<2x128xf32>
    %43 = arith.mulf %42, %42 : vector<2x128xf32>
    %cst_22 = arith.constant dense<0.000000e+00> : vector<128xf32>
    %44 = vector.multi_reduction <add>, %43, %cst_22 [0] : vector<2x128xf32> to vector<128xf32>
    %45 = vector.shape_cast %44 : vector<128xf32> to vector<1x128xf32>
    %cst_23 = arith.constant 0.000000e+00 : f32
    %46 = vector.broadcast %cst_23 : f32 to vector<1x128xf32>
    %47 = arith.addf %46, %45 : vector<1x128xf32>
    %48 = vector.broadcast %40 : vector<1x128xf32> to vector<2x128xf32>
    %49 = arith.subf %24, %48 : vector<2x128xf32>
    %50 = arith.mulf %49, %49 : vector<2x128xf32>
    %cst_24 = arith.constant dense<0.000000e+00> : vector<128xf32>
    %51 = vector.multi_reduction <add>, %50, %cst_24 [0] : vector<2x128xf32> to vector<128xf32>
    %52 = vector.shape_cast %51 : vector<128xf32> to vector<1x128xf32>
    %53 = arith.addf %47, %52 : vector<1x128xf32>
    %54 = vector.broadcast %40 : vector<1x128xf32> to vector<2x128xf32>
    %55 = arith.subf %28, %54 : vector<2x128xf32>
    %56 = arith.mulf %55, %55 : vector<2x128xf32>
    %cst_25 = arith.constant dense<0.000000e+00> : vector<128xf32>
    %57 = vector.multi_reduction <add>, %56, %cst_25 [0] : vector<2x128xf32> to vector<128xf32>
    %58 = vector.shape_cast %57 : vector<128xf32> to vector<1x128xf32>
    %59 = arith.addf %53, %58 : vector<1x128xf32>
    %cst_26 = arith.constant 0.166666672 : f32
    %60 = vector.broadcast %cst_26 : f32 to vector<1x128xf32>
    %61 = arith.mulf %59, %60 : vector<1x128xf32>
    %cst_27 = arith.constant 9.99999974E-6 : f32
    %62 = vector.broadcast %cst_27 : f32 to vector<1x128xf32>
    %63 = arith.addf %61, %62 : vector<1x128xf32>
    %64 = math.rsqrt %63 : vector<1x128xf32>
    %c0_28 = arith.constant 0 : index
    %c0_29 = arith.constant 0 : index
    %65 = vector.load %arg5[%c0_28, %c0_29] : memref<1x128xf32, #tpu.memory_space<vmem>>, vector<1x128xf32>
    %66 = vector.broadcast %40 : vector<1x128xf32> to vector<2x128xf32>
    %67 = arith.subf %20, %66 : vector<2x128xf32>
    %68 = vector.broadcast %65 : vector<1x128xf32> to vector<2x128xf32>
    %69 = arith.mulf %68, %67 : vector<2x128xf32>
    %70 = vector.broadcast %64 : vector<1x128xf32> to vector<2x128xf32>
    %71 = arith.mulf %69, %70 : vector<2x128xf32>
    %c0_30 = arith.constant 0 : index
    %c0_31 = arith.constant 0 : index
    %72 = vector.load %arg6[%c0_30, %c0_31] : memref<1x128xf32, #tpu.memory_space<vmem>>, vector<1x128xf32>
    %73 = vector.broadcast %72 : vector<1x128xf32> to vector<2x128xf32>
    %74 = arith.addf %71, %73 : vector<2x128xf32>
    %c0_32 = arith.constant 0 : index
    %c0_33 = arith.constant 0 : index
    %75 = vector.load %arg5[%c0_32, %c0_33] : memref<1x128xf32, #tpu.memory_space<vmem>>, vector<1x128xf32>
    %76 = vector.broadcast %40 : vector<1x128xf32> to vector<2x128xf32>
    %77 = arith.subf %24, %76 : vector<2x128xf32>
    %78 = vector.broadcast %75 : vector<1x128xf32> to vector<2x128xf32>
    %79 = arith.mulf %78, %77 : vector<2x128xf32>
    %80 = vector.broadcast %64 : vector<1x128xf32> to vector<2x128xf32>
    %81 = arith.mulf %79, %80 : vector<2x128xf32>
    %c0_34 = arith.constant 0 : index
    %c0_35 = arith.constant 0 : index
    %82 = vector.load %arg6[%c0_34, %c0_35] : memref<1x128xf32, #tpu.memory_space<vmem>>, vector<1x128xf32>
    %83 = vector.broadcast %82 : vector<1x128xf32> to vector<2x128xf32>
    %84 = arith.addf %81, %83 : vector<2x128xf32>
    %c0_36 = arith.constant 0 : index
    %c0_37 = arith.constant 0 : index
    %85 = vector.load %arg5[%c0_36, %c0_37] : memref<1x128xf32, #tpu.memory_space<vmem>>, vector<1x128xf32>
    %86 = vector.broadcast %40 : vector<1x128xf32> to vector<2x128xf32>
    %87 = arith.subf %28, %86 : vector<2x128xf32>
    %88 = vector.broadcast %85 : vector<1x128xf32> to vector<2x128xf32>
    %89 = arith.mulf %88, %87 : vector<2x128xf32>
    %90 = vector.broadcast %64 : vector<1x128xf32> to vector<2x128xf32>
    %91 = arith.mulf %89, %90 : vector<2x128xf32>
    %c0_38 = arith.constant 0 : index
    %c0_39 = arith.constant 0 : index
    %92 = vector.load %arg6[%c0_38, %c0_39] : memref<1x128xf32, #tpu.memory_space<vmem>>, vector<1x128xf32>
    %93 = vector.broadcast %92 : vector<1x128xf32> to vector<2x128xf32>
    %94 = arith.addf %91, %93 : vector<2x128xf32>
    %c0_40 = arith.constant 0 : index
    %c0_41 = arith.constant 0 : index
    %95 = vector.load %arg7[%c0_40, %c0_41] : memref<128x128xbf16, #tpu.memory_space<vmem>>, vector<128x128xbf16>
    %96 = arith.extf %95 : vector<128x128xbf16> to vector<128x128xf32>
    %c0_42 = arith.constant 0 : index
    %c0_43 = arith.constant 0 : index
    %97 = vector.load %arg9[%c0_42, %c0_43] : memref<128x128xbf16, #tpu.memory_space<vmem>>, vector<128x128xbf16>
    %98 = arith.extf %97 : vector<128x128xbf16> to vector<128x128xf32>
    %cst_44 = arith.constant dense<0.000000e+00> : vector<2x128xf32>
    %99 = tpu.matmul %74, %96, %cst_44 {dimension_numbers = #tpu.dot_dimension_numbers<[1], [0], [0], [1], [0, 0, 1, 1], [], []>} : vector<2x128xf32>, vector<128x128xf32>, vector<2x128xf32> -> vector<2x128xf32>
    %c0_45 = arith.constant 0 : index
    %c0_46 = arith.constant 0 : index
    %100 = vector.load %arg8[%c0_45, %c0_46] : memref<1x128xf32, #tpu.memory_space<vmem>>, vector<1x128xf32>
    %101 = vector.broadcast %100 : vector<1x128xf32> to vector<2x128xf32>
    %102 = arith.addf %99, %101 : vector<2x128xf32>
    %cst_47 = arith.constant dense<0.000000e+00> : vector<2x128xf32>
    %103 = tpu.matmul %84, %96, %cst_47 {dimension_numbers = #tpu.dot_dimension_numbers<[1], [0], [0], [1], [0, 0, 1, 1], [], []>} : vector<2x128xf32>, vector<128x128xf32>, vector<2x128xf32> -> vector<2x128xf32>
    %c0_48 = arith.constant 0 : index
    %c0_49 = arith.constant 0 : index
    %104 = vector.load %arg8[%c0_48, %c0_49] : memref<1x128xf32, #tpu.memory_space<vmem>>, vector<1x128xf32>
    %105 = vector.broadcast %104 : vector<1x128xf32> to vector<2x128xf32>
    %106 = arith.addf %103, %105 : vector<2x128xf32>
    %cst_50 = arith.constant dense<0.000000e+00> : vector<2x128xf32>
    %107 = tpu.matmul %94, %96, %cst_50 {dimension_numbers = #tpu.dot_dimension_numbers<[1], [0], [0], [1], [0, 0, 1, 1], [], []>} : vector<2x128xf32>, vector<128x128xf32>, vector<2x128xf32> -> vector<2x128xf32>
    %c0_51 = arith.constant 0 : index
    %c0_52 = arith.constant 0 : index
    %108 = vector.load %arg8[%c0_51, %c0_52] : memref<1x128xf32, #tpu.memory_space<vmem>>, vector<1x128xf32>
    %109 = vector.broadcast %108 : vector<1x128xf32> to vector<2x128xf32>
    %110 = arith.addf %107, %109 : vector<2x128xf32>
    %cst_53 = arith.constant dense<0.000000e+00> : vector<2x128xf32>
    %111 = tpu.matmul %74, %98, %cst_53 {dimension_numbers = #tpu.dot_dimension_numbers<[1], [0], [0], [1], [0, 0, 1, 1], [], []>} : vector<2x128xf32>, vector<128x128xf32>, vector<2x128xf32> -> vector<2x128xf32>
    %c0_54 = arith.constant 0 : index
    %c0_55 = arith.constant 0 : index
    %112 = vector.load %arg10[%c0_54, %c0_55] : memref<1x128xf32, #tpu.memory_space<vmem>>, vector<1x128xf32>
    %113 = vector.broadcast %112 : vector<1x128xf32> to vector<2x128xf32>
    %114 = arith.addf %111, %113 : vector<2x128xf32>
    %cst_56 = arith.constant dense<0.000000e+00> : vector<2x128xf32>
    %115 = tpu.matmul %84, %98, %cst_56 {dimension_numbers = #tpu.dot_dimension_numbers<[1], [0], [0], [1], [0, 0, 1, 1], [], []>} : vector<2x128xf32>, vector<128x128xf32>, vector<2x128xf32> -> vector<2x128xf32>
    %c0_57 = arith.constant 0 : index
    %c0_58 = arith.constant 0 : index
    %116 = vector.load %arg10[%c0_57, %c0_58] : memref<1x128xf32, #tpu.memory_space<vmem>>, vector<1x128xf32>
    %117 = vector.broadcast %116 : vector<1x128xf32> to vector<2x128xf32>
    %118 = arith.addf %115, %117 : vector<2x128xf32>
    %cst_59 = arith.constant dense<0.000000e+00> : vector<2x128xf32>
    %119 = tpu.matmul %94, %98, %cst_59 {dimension_numbers = #tpu.dot_dimension_numbers<[1], [0], [0], [1], [0, 0, 1, 1], [], []>} : vector<2x128xf32>, vector<128x128xf32>, vector<2x128xf32> -> vector<2x128xf32>
    %c0_60 = arith.constant 0 : index
    %c0_61 = arith.constant 0 : index
    %120 = vector.load %arg10[%c0_60, %c0_61] : memref<1x128xf32, #tpu.memory_space<vmem>>, vector<1x128xf32>
    %121 = vector.broadcast %120 : vector<1x128xf32> to vector<2x128xf32>
    %122 = arith.addf %119, %121 : vector<2x128xf32>
    %c0_62 = arith.constant 0 : index
    %c0_63 = arith.constant 0 : index
    %123 = vector.load %arg11[%c0_62, %c0_63] : memref<1x1xf32, #tpu.memory_space<vmem>>, vector<1x1xf32>
    %124 = arith.mulf %102, %74 : vector<2x128xf32>
    %cst_64 = arith.constant dense<0.000000e+00> : vector<2xf32>
    %125 = vector.multi_reduction <add>, %124, %cst_64 [1] : vector<2x128xf32> to vector<2xf32>
    %126 = vector.shape_cast %125 : vector<2xf32> to vector<2x1xf32>
    %127 = arith.mulf %102, %84 : vector<2x128xf32>
    %cst_65 = arith.constant dense<0.000000e+00> : vector<2xf32>
    %128 = vector.multi_reduction <add>, %127, %cst_65 [1] : vector<2x128xf32> to vector<2xf32>
    %129 = vector.shape_cast %128 : vector<2xf32> to vector<2x1xf32>
    %130 = arith.mulf %102, %94 : vector<2x128xf32>
    %cst_66 = arith.constant dense<0.000000e+00> : vector<2xf32>
    %131 = vector.multi_reduction <add>, %130, %cst_66 [1] : vector<2x128xf32> to vector<2xf32>
    %132 = vector.shape_cast %131 : vector<2xf32> to vector<2x1xf32>
    %133 = arith.maximumf %126, %129 : vector<2x1xf32>
    %134 = arith.maximumf %133, %132 : vector<2x1xf32>
    %135 = arith.subf %126, %134 : vector<2x1xf32>
    %136 = math.exp %135 : vector<2x1xf32>
    %137 = arith.subf %129, %134 : vector<2x1xf32>
    %138 = math.exp %137 : vector<2x1xf32>
    %139 = arith.subf %132, %134 : vector<2x1xf32>
    %140 = math.exp %139 : vector<2x1xf32>
    %141 = arith.addf %136, %138 : vector<2x1xf32>
    %142 = arith.addf %141, %140 : vector<2x1xf32>
    %143 = tpu.reciprocal %142 {approx = true} : vector<2x1xf32> -> vector<2x1xf32>
    %144 = arith.mulf %136, %143 : vector<2x1xf32>
    %145 = vector.broadcast %144 : vector<2x1xf32> to vector<2x128xf32>
    %146 = arith.mulf %145, %114 : vector<2x128xf32>
    %147 = arith.mulf %138, %143 : vector<2x1xf32>
    %148 = vector.broadcast %147 : vector<2x1xf32> to vector<2x128xf32>
    %149 = arith.mulf %148, %118 : vector<2x128xf32>
    %150 = arith.addf %146, %149 : vector<2x128xf32>
    %151 = arith.mulf %140, %143 : vector<2x1xf32>
    %152 = vector.broadcast %151 : vector<2x1xf32> to vector<2x128xf32>
    %153 = arith.mulf %152, %122 : vector<2x128xf32>
    %154 = arith.addf %150, %153 : vector<2x128xf32>
    %155 = arith.mulf %106, %74 : vector<2x128xf32>
    %cst_67 = arith.constant dense<0.000000e+00> : vector<2xf32>
    %156 = vector.multi_reduction <add>, %155, %cst_67 [1] : vector<2x128xf32> to vector<2xf32>
    %157 = vector.shape_cast %156 : vector<2xf32> to vector<2x1xf32>
    %158 = arith.mulf %106, %84 : vector<2x128xf32>
    %cst_68 = arith.constant dense<0.000000e+00> : vector<2xf32>
    %159 = vector.multi_reduction <add>, %158, %cst_68 [1] : vector<2x128xf32> to vector<2xf32>
    %160 = vector.shape_cast %159 : vector<2xf32> to vector<2x1xf32>
    %161 = arith.mulf %106, %94 : vector<2x128xf32>
    %cst_69 = arith.constant dense<0.000000e+00> : vector<2xf32>
    %162 = vector.multi_reduction <add>, %161, %cst_69 [1] : vector<2x128xf32> to vector<2xf32>
    %163 = vector.shape_cast %162 : vector<2xf32> to vector<2x1xf32>
    %164 = arith.maximumf %157, %160 : vector<2x1xf32>
    %165 = arith.maximumf %164, %163 : vector<2x1xf32>
    %166 = arith.subf %157, %165 : vector<2x1xf32>
    %167 = math.exp %166 : vector<2x1xf32>
    %168 = arith.subf %160, %165 : vector<2x1xf32>
    %169 = math.exp %168 : vector<2x1xf32>
    %170 = arith.subf %163, %165 : vector<2x1xf32>
    %171 = math.exp %170 : vector<2x1xf32>
    %172 = arith.addf %167, %169 : vector<2x1xf32>
    %173 = arith.addf %172, %171 : vector<2x1xf32>
    %174 = tpu.reciprocal %173 {approx = true} : vector<2x1xf32> -> vector<2x1xf32>
    %175 = arith.mulf %167, %174 : vector<2x1xf32>
    %176 = vector.broadcast %175 : vector<2x1xf32> to vector<2x128xf32>
    %177 = arith.mulf %176, %114 : vector<2x128xf32>
    %178 = arith.mulf %169, %174 : vector<2x1xf32>
    %179 = vector.broadcast %178 : vector<2x1xf32> to vector<2x128xf32>
    %180 = arith.mulf %179, %118 : vector<2x128xf32>
    %181 = arith.addf %177, %180 : vector<2x128xf32>
    %182 = arith.mulf %171, %174 : vector<2x1xf32>
    %183 = vector.broadcast %182 : vector<2x1xf32> to vector<2x128xf32>
    %184 = arith.mulf %183, %122 : vector<2x128xf32>
    %185 = arith.addf %181, %184 : vector<2x128xf32>
    %186 = arith.mulf %110, %74 : vector<2x128xf32>
    %cst_70 = arith.constant dense<0.000000e+00> : vector<2xf32>
    %187 = vector.multi_reduction <add>, %186, %cst_70 [1] : vector<2x128xf32> to vector<2xf32>
    %188 = vector.shape_cast %187 : vector<2xf32> to vector<2x1xf32>
    %189 = arith.mulf %110, %84 : vector<2x128xf32>
    %cst_71 = arith.constant dense<0.000000e+00> : vector<2xf32>
    %190 = vector.multi_reduction <add>, %189, %cst_71 [1] : vector<2x128xf32> to vector<2xf32>
    %191 = vector.shape_cast %190 : vector<2xf32> to vector<2x1xf32>
    %192 = arith.mulf %110, %94 : vector<2x128xf32>
    %cst_72 = arith.constant dense<0.000000e+00> : vector<2xf32>
    %193 = vector.multi_reduction <add>, %192, %cst_72 [1] : vector<2x128xf32> to vector<2xf32>
    %194 = vector.shape_cast %193 : vector<2xf32> to vector<2x1xf32>
    %195 = arith.maximumf %188, %191 : vector<2x1xf32>
    %196 = arith.maximumf %195, %194 : vector<2x1xf32>
    %197 = arith.subf %188, %196 : vector<2x1xf32>
    %198 = math.exp %197 : vector<2x1xf32>
    %199 = arith.subf %191, %196 : vector<2x1xf32>
    %200 = math.exp %199 : vector<2x1xf32>
    %201 = arith.subf %194, %196 : vector<2x1xf32>
    %202 = math.exp %201 : vector<2x1xf32>
    %203 = arith.addf %198, %200 : vector<2x1xf32>
    %204 = arith.addf %203, %202 : vector<2x1xf32>
    %205 = tpu.reciprocal %204 {approx = true} : vector<2x1xf32> -> vector<2x1xf32>
    %206 = arith.mulf %198, %205 : vector<2x1xf32>
    %207 = vector.broadcast %206 : vector<2x1xf32> to vector<2x128xf32>
    %208 = arith.mulf %207, %114 : vector<2x128xf32>
    %209 = arith.mulf %200, %205 : vector<2x1xf32>
    %210 = vector.broadcast %209 : vector<2x1xf32> to vector<2x128xf32>
    %211 = arith.mulf %210, %118 : vector<2x128xf32>
    %212 = arith.addf %208, %211 : vector<2x128xf32>
    %213 = arith.mulf %202, %205 : vector<2x1xf32>
    %214 = vector.broadcast %213 : vector<2x1xf32> to vector<2x128xf32>
    %215 = arith.mulf %214, %122 : vector<2x128xf32>
    %216 = arith.addf %212, %215 : vector<2x128xf32>
    %217 = vector.broadcast %123 : vector<1x1xf32> to vector<2x128xf32>
    %218 = arith.mulf %217, %154 : vector<2x128xf32>
    %219 = arith.addf %218, %74 : vector<2x128xf32>
    %220 = vector.broadcast %123 : vector<1x1xf32> to vector<2x128xf32>
    %221 = arith.mulf %220, %185 : vector<2x128xf32>
    %222 = arith.addf %221, %84 : vector<2x128xf32>
    %223 = vector.broadcast %123 : vector<1x1xf32> to vector<2x128xf32>
    %224 = arith.mulf %223, %216 : vector<2x128xf32>
    %225 = arith.addf %224, %94 : vector<2x128xf32>
    %c0_73 = arith.constant 0 : index
    %c0_74 = arith.constant 0 : index
    %226 = vector.load %arg13[%c0_73, %c0_74] : memref<1x1024xf32, #tpu.memory_space<vmem>>, vector<1x1024xf32>
    %cst_75 = arith.constant 0.000000e+00 : f32
    %227 = vector.broadcast %cst_75 : f32 to vector<2x128xf32>
    %228 = arith.cmpf oge, %219, %227 : vector<2x128xf32>
    %cst_76 = arith.constant 2.000000e-01 : f32
    %229 = vector.broadcast %cst_76 : f32 to vector<2x128xf32>
    %230 = arith.mulf %229, %219 : vector<2x128xf32>
    %231 = arith.select %228, %219, %230 : vector<2x128xi1>, vector<2x128xf32>
    %232 = vector.extract_strided_slice %231 {offsets = [0, 0], sizes = [2, 80], strides = [1, 1]} : vector<2x128xf32> to vector<2x80xf32>
    %c0_77 = arith.constant 0 : index
    %c0_78 = arith.constant 0 : index
    %233 = vector.load %arg12[%c0_77, %c0_78] : memref<240x1024xbf16, #tpu.memory_space<vmem>>, vector<80x1024xbf16>
    %234 = arith.extf %233 : vector<80x1024xbf16> to vector<80x1024xf32>
    %cst_79 = arith.constant dense<0.000000e+00> : vector<2x1024xf32>
    %235 = tpu.matmul %232, %234, %cst_79 {dimension_numbers = #tpu.dot_dimension_numbers<[1], [0], [0], [1], [0, 0, 1, 1], [], []>} : vector<2x80xf32>, vector<80x1024xf32>, vector<2x1024xf32> -> vector<2x1024xf32>
    %236 = vector.broadcast %226 : vector<1x1024xf32> to vector<2x1024xf32>
    %237 = arith.addf %236, %235 : vector<2x1024xf32>
    %cst_80 = arith.constant 0.000000e+00 : f32
    %238 = vector.broadcast %cst_80 : f32 to vector<2x128xf32>
    %239 = arith.cmpf oge, %222, %238 : vector<2x128xf32>
    %cst_81 = arith.constant 2.000000e-01 : f32
    %240 = vector.broadcast %cst_81 : f32 to vector<2x128xf32>
    %241 = arith.mulf %240, %222 : vector<2x128xf32>
    %242 = arith.select %239, %222, %241 : vector<2x128xi1>, vector<2x128xf32>
    %243 = vector.extract_strided_slice %242 {offsets = [0, 0], sizes = [2, 80], strides = [1, 1]} : vector<2x128xf32> to vector<2x80xf32>
    %c80 = arith.constant 80 : index
    %c0_82 = arith.constant 0 : index
    %244 = vector.load %arg12[%c80, %c0_82] : memref<240x1024xbf16, #tpu.memory_space<vmem>>, vector<80x1024xbf16>
    %245 = arith.extf %244 : vector<80x1024xbf16> to vector<80x1024xf32>
    %cst_83 = arith.constant dense<0.000000e+00> : vector<2x1024xf32>
    %246 = tpu.matmul %243, %245, %cst_83 {dimension_numbers = #tpu.dot_dimension_numbers<[1], [0], [0], [1], [0, 0, 1, 1], [], []>} : vector<2x80xf32>, vector<80x1024xf32>, vector<2x1024xf32> -> vector<2x1024xf32>
    %247 = arith.addf %237, %246 : vector<2x1024xf32>
    %cst_84 = arith.constant 0.000000e+00 : f32
    %248 = vector.broadcast %cst_84 : f32 to vector<2x128xf32>
    %249 = arith.cmpf oge, %225, %248 : vector<2x128xf32>
    %cst_85 = arith.constant 2.000000e-01 : f32
    %250 = vector.broadcast %cst_85 : f32 to vector<2x128xf32>
    %251 = arith.mulf %250, %225 : vector<2x128xf32>
    %252 = arith.select %249, %225, %251 : vector<2x128xi1>, vector<2x128xf32>
    %253 = vector.extract_strided_slice %252 {offsets = [0, 0], sizes = [2, 80], strides = [1, 1]} : vector<2x128xf32> to vector<2x80xf32>
    %c160 = arith.constant 160 : index
    %c0_86 = arith.constant 0 : index
    %254 = vector.load %arg12[%c160, %c0_86] : memref<240x1024xbf16, #tpu.memory_space<vmem>>, vector<80x1024xbf16>
    %255 = arith.extf %254 : vector<80x1024xbf16> to vector<80x1024xf32>
    %cst_87 = arith.constant dense<0.000000e+00> : vector<2x1024xf32>
    %256 = tpu.matmul %253, %255, %cst_87 {dimension_numbers = #tpu.dot_dimension_numbers<[1], [0], [0], [1], [0, 0, 1, 1], [], []>} : vector<2x80xf32>, vector<80x1024xf32>, vector<2x1024xf32> -> vector<2x1024xf32>
    %257 = arith.addf %247, %256 : vector<2x1024xf32>
    %cst_88 = arith.constant dense<0.000000e+00> : vector<1024xf32>
    %258 = vector.multi_reduction <add>, %257, %cst_88 [0] : vector<2x1024xf32> to vector<1024xf32>
    %259 = vector.shape_cast %258 : vector<1024xf32> to vector<1x1024xf32>
    %cst_89 = arith.constant 2.000000e+00 : f32
    %260 = vector.broadcast %cst_89 : f32 to vector<1x1024xf32>
    %261 = arith.divf %259, %260 : vector<1x1024xf32>
    %262 = vector.broadcast %261 : vector<1x1024xf32> to vector<2x1024xf32>
    %263 = arith.subf %257, %262 : vector<2x1024xf32>
    %264 = arith.mulf %263, %263 : vector<2x1024xf32>
    %cst_90 = arith.constant dense<0.000000e+00> : vector<1024xf32>
    %265 = vector.multi_reduction <add>, %264, %cst_90 [0] : vector<2x1024xf32> to vector<1024xf32>
    %266 = vector.shape_cast %265 : vector<1024xf32> to vector<1x1024xf32>
    %cst_91 = arith.constant 2.000000e+00 : f32
    %267 = vector.broadcast %cst_91 : f32 to vector<1x1024xf32>
    %268 = arith.divf %266, %267 : vector<1x1024xf32>
    %c0_92 = arith.constant 0 : index
    %c0_93 = arith.constant 0 : index
    %269 = vector.load %arg14[%c0_92, %c0_93] : memref<1x1024xf32, #tpu.memory_space<vmem>>, vector<1x1024xf32>
    %270 = vector.broadcast %261 : vector<1x1024xf32> to vector<2x1024xf32>
    %271 = arith.subf %257, %270 : vector<2x1024xf32>
    %272 = vector.broadcast %269 : vector<1x1024xf32> to vector<2x1024xf32>
    %273 = arith.mulf %272, %271 : vector<2x1024xf32>
    %cst_94 = arith.constant 9.99999974E-6 : f32
    %274 = vector.broadcast %cst_94 : f32 to vector<1x1024xf32>
    %275 = arith.addf %268, %274 : vector<1x1024xf32>
    %276 = math.rsqrt %275 : vector<1x1024xf32>
    %277 = vector.broadcast %276 : vector<1x1024xf32> to vector<2x1024xf32>
    %278 = arith.mulf %273, %277 : vector<2x1024xf32>
    %c0_95 = arith.constant 0 : index
    %c0_96 = arith.constant 0 : index
    %279 = vector.load %arg15[%c0_95, %c0_96] : memref<1x1024xf32, #tpu.memory_space<vmem>>, vector<1x1024xf32>
    %280 = vector.broadcast %279 : vector<1x1024xf32> to vector<2x1024xf32>
    %281 = arith.addf %278, %280 : vector<2x1024xf32>
    %cst_97 = arith.constant 0.000000e+00 : f32
    %282 = vector.broadcast %cst_97 : f32 to vector<2x1024xf32>
    %283 = arith.cmpf oge, %281, %282 : vector<2x1024xf32>
    %cst_98 = arith.constant 2.000000e-01 : f32
    %284 = vector.broadcast %cst_98 : f32 to vector<2x1024xf32>
    %285 = arith.mulf %284, %281 : vector<2x1024xf32>
    %286 = arith.select %283, %281, %285 : vector<2x1024xi1>, vector<2x1024xf32>
    %c0_99 = arith.constant 0 : index
    %c0_100 = arith.constant 0 : index
    %287 = vector.load %arg16[%c0_99, %c0_100] : memref<1x1024xf32, #tpu.memory_space<vmem>>, vector<1x1024xf32>
    %288 = vector.broadcast %287 : vector<1x1024xf32> to vector<2x1024xf32>
    %289 = arith.mulf %286, %288 : vector<2x1024xf32>
    %cst_101 = arith.constant dense<0.000000e+00> : vector<2xf32>
    %290 = vector.multi_reduction <add>, %289, %cst_101 [1] : vector<2x1024xf32> to vector<2xf32>
    %291 = vector.shape_cast %290 : vector<2xf32> to vector<2x1xf32>
    %c0_102 = arith.constant 0 : index
    %c0_103 = arith.constant 0 : index
    %292 = vector.load %arg17[%c0_102, %c0_103] : memref<1x1xf32, #tpu.memory_space<vmem>>, vector<1x1xf32>
    %293 = vector.broadcast %292 : vector<1x1xf32> to vector<2x1xf32>
    %294 = arith.addf %291, %293 : vector<2x1xf32>
    %295 = arith.negf %294 : vector<2x1xf32>
    %296 = math.exp %295 : vector<2x1xf32>
    %cst_104 = arith.constant 1.000000e+00 : f32
    %297 = vector.broadcast %cst_104 : f32 to vector<2x1xf32>
    %298 = arith.addf %297, %296 : vector<2x1xf32>
    %299 = arith.divf %297, %298 : vector<2x1xf32>
    %c0_105 = arith.constant 0 : index
    %c0_106 = arith.constant 0 : index
    %300 = vector.load %arg18[%c0_105, %c0_106] : memref<2x16xf32, #tpu.memory_space<vmem>>, vector<2x1xf32>
    tpu.vector_store %arg18[%c0_105, %c0_106], %299 {strides = array<i32>} : memref<2x16xf32, #tpu.memory_space<vmem>>, vector<2x1xf32>,
    %c0_107 = arith.constant 0 : index
    %c1 = arith.constant 1 : index
    %301 = vector.load %arg18[%c0_107, %c1] : memref<2x16xf32, #tpu.memory_space<vmem>>, vector<2x1xf32>
    tpu.vector_store %arg18[%c0_107, %c1], %294 {strides = array<i32>} : memref<2x16xf32, #tpu.memory_space<vmem>>, vector<2x1xf32>,
    %c0_108 = arith.constant 0 : index
    %c2 = arith.constant 2 : index
    %302 = vector.load %arg18[%c0_108, %c2] : memref<2x16xf32, #tpu.memory_space<vmem>>, vector<2x8xf32>
    tpu.vector_store %arg18[%c0_108, %c2], %13 {strides = array<i32>} : memref<2x16xf32, #tpu.memory_space<vmem>>, vector<2x8xf32>,
    %cst_109 = arith.constant 0.000000e+00 : f32
    %303 = vector.broadcast %cst_109 : f32 to vector<2x6xf32>
    %c0_110 = arith.constant 0 : index
    %c10 = arith.constant 10 : index
    %304 = vector.load %arg18[%c0_110, %c10] : memref<2x16xf32, #tpu.memory_space<vmem>>, vector<2x6xf32>
    tpu.vector_store %arg18[%c0_110, %c10], %303 {strides = array<i32>} : memref<2x16xf32, #tpu.memory_space<vmem>>, vector<2x6xf32>,
    return
  }
}

</mosaic_0001>

<bundles_post_ra>
// kernel: discriminator_forward.1
= control target key start
LH: loop header
LB: loop body
LE: loop exit
PB: predicated region body
PF: predicated region fallthrough
CT: control target
= control target key end

     0   :  { %s3138_s0 = inlined_call_operand.vmem [shape: f32[2,8,256], index: 0, kind: input, shape index: {}]   ;;  %s3139_s1 = inlined_call_operand.hbm [shape: f32[1,256], index: 1, kind: input, shape index: {}]   ;;  %s3140_s2 = inlined_call_operand.<no memory space> [shape: f32[1,1], index: 2, kind: input, shape index: {}]   ;;  %s3141_s3 = inlined_call_operand.hbm [shape: bf16[8,384], index: 3, kind: input, shape index: {}]   ;;  %s3142_s4 = inlined_call_operand.hbm [shape: f32[1,128], index: 4, kind: input, shape index: {}]   ;;  %s3143_s5 = inlined_call_operand.hbm [shape: f32[1,128], index: 5, kind: input, shape index: {}]   ;;  %s3144_s6 = inlined_call_operand.hbm [shape: f32[1,128], index: 6, kind: input, shape index: {}]   ;;  %s3145_s7 = inlined_call_operand.vmem [shape: bf16[128,128], index: 7, kind: input, shape index: {}]   ;;  %s3146_s8 = inlined_call_operand.hbm [shape: f32[1,128], index: 8, kind: input, shape index: {}]   ;;  %s3147_s9 = inlined_call_operand.hbm [shape: bf16[128,128], index: 9, kind: input, shape index: {}]   ;;  %s3148_s10 = inlined_call_operand.hbm [shape: f32[1,128], index: 10, kind: input, shape index: {}]   ;;  %s3149_s12 = inlined_call_operand.hbm [shape: bf16[240,1024], index: 12, kind: input, shape index: {}]   ;;  %s3150_s13 = inlined_call_operand.vmem [shape: f32[1,1024], index: 13, kind: input, shape index: {}]   ;;  %s3151_s14 = inlined_call_operand.hbm [shape: f32[1,1024], index: 14, kind: input, shape index: {}]   ;;  %s3152_s15 = inlined_call_operand.hbm [shape: f32[1,1024], index: 15, kind: input, shape index: {}]   ;;  %s3153_s16 = inlined_call_operand.vmem [shape: f32[1,1024], index: 16, kind: input, shape index: {}]   ;;  %s3154_s18 = inlined_call_operand.vmem [shape: f32[2,16], index: 18, kind: output, shape index: {}]   ;;  %s3155_s11 = inlined_call_operand.<no memory space> [shape: f32[1,1], index: 11, kind: input, shape index: {}]   ;;  %s3156_s17 = inlined_call_operand.<no memory space> [shape: f32[1,1], index: 17, kind: input, shape index: {}]  }
   0x1   :  { %3158 = sst [smem:[#allocation28_spill]] %s3138_s0  ;;  %v25_v1 = vstv %s3155_s11  ;;  %v27_v2 = vstv %s3156_s17 }
   0x2   :  { %3159 = sst [smem:[#allocation29_spill]] %s3139_s1  ;;  %26 = vst [vmem:[#allocation3] sm:$0x1] %v25_v1 }
   0x3   :  { %3160 = sst [smem:[#allocation30_spill]] %s3140_s2  ;;  %28 = vst [vmem:[#allocation4] sm:$0x1] %v27_v2 }
   0x4   :  { %s3161_s29 = sld [smem:[#allocation30_spill]] }
   0xa   :  { %v23_v0 = vstv %s3161_s29 }
   0xb   :  { %24 = vst [vmem:[#allocation2] sm:$0x1] %v23_v0 }
   0xc   :  { %29 = vsyncpa [#allocation6], 0 }
   0xd   :  { %30 = vsyncpa [#allocation8], 0 }
   0xe   :  { %31 = vsyncpa [#allocation11], 0 }
   0xf   :  { %32 = vsyncpa [#allocation14], 0 }
  0x10   :  { %33 = vsyncpa [#allocation17], 0  ;;  %s55_s22 = sshll.u32 %s3141_s3, 4  ;;  %s56_s22 = int_to_ptr.hbm [resolvable:$true] %s55_s22 }
  0x11   :  { %34 = vsyncpa [#allocation20], 0  ;;  %s2506_s2 = smov [#allocation7]   ;;  %s77_s17 = sshll.u32 %s3143_s5, 4  ;;  %s78_s17 = int_to_ptr.hbm [resolvable:$true] %s77_s17 }
  0x12   :  { %s57_s11 = sshll.u32 %s2506_s2, 4  ;;  %s2507_s25 = smov [#allocation10]   ;;  %s58_s11 = int_to_ptr.vmem [resolvable:$true] %s57_s11 }
  0x13   :  { %60 = dma.hbm_to_vmem [thread:$0]  %s56_s22, 192, %s58_s11, [#allocation8]  }
  0x14   :  { %s79_s26 = sshll.u32 %s2507_s25, 4  ;;  %s101_s29 = sshll.u32 %s3146_s8, 4  ;;  %s80_s26 = int_to_ptr.vmem [resolvable:$true] %s79_s26  ;;  %s102_s29 = int_to_ptr.hbm [resolvable:$true] %s101_s29 }
  0x15   :  { %82 = dma.hbm_to_vmem [thread:$0]  %s78_s17, 16, %s80_s26, [#allocation11]  }
  0x16   :  { %s125_s0 = sshll.u32 %s3148_s10, 4  ;;  %s2508_s19 = smov [#allocation13]   ;;  %s126_s0 = int_to_ptr.hbm [resolvable:$true] %s125_s0 }
  0x17   :  { %s103_s1 = sshll.u32 %s2508_s19, 4  ;;  %s2509_s5 = smov [#allocation16]   ;;  %s104_s1 = int_to_ptr.vmem [resolvable:$true] %s103_s1 }
  0x18   :  { %106 = dma.hbm_to_vmem [thread:$0]  %s102_s29, 16, %s104_s1, [#allocation14]  }
  0x19   :  { %s127_s20 = sshll.u32 %s2509_s5, 4  ;;  %s153_s2 = sshll.u32 %s3151_s14, 4  ;;  %s128_s20 = int_to_ptr.vmem [resolvable:$true] %s127_s20  ;;  %s154_s2 = int_to_ptr.hbm [resolvable:$true] %s153_s2 }
  0x1a   :  { %130 = dma.hbm_to_vmem [thread:$0]  %s126_s0, 16, %s128_s20, [#allocation17]  }
  0x1b   :  { %s3162_s23 = sld [smem:[#allocation29_spill]]  ;;  %s2510_s17 = smov [#allocation19]  }
  0x1c   :  { %s155_s10 = sshll.u32 %s2510_s17, 4  ;;  %s2511_s25 = smov [#allocation5]   ;;  %s156_s10 = int_to_ptr.vmem [resolvable:$true] %s155_s10 }
  0x1d   :  { %158 = dma.hbm_to_vmem [thread:$0]  %s154_s2, 128, %s156_s10, [#allocation20]  }
  0x1e   :  { %s44_s26 = sshll.u32 %s2511_s25, 4  ;;  %s66_s29 = sshll.u32 %s3142_s4, 4  ;;  %s45_s26 = int_to_ptr.vmem [resolvable:$true] %s44_s26  ;;  %s67_s29 = int_to_ptr.hbm [resolvable:$true] %s66_s29 }
  0x1f   :  { %s88_s30 = sshll.u32 %s3144_s6, 4  ;;  %s2512_s0 = smov [#allocation9]   ;;  %s89_s30 = int_to_ptr.hbm [resolvable:$true] %s88_s30 }
  0x20   :  { %s68_s19 = sshll.u32 %s2512_s0, 4  ;;  %s2513_s1 = smov [#allocation12]   ;;  %s69_s19 = int_to_ptr.vmem [resolvable:$true] %s68_s19 }
  0x21   :  { %s42_s24 = sshll.u32 %s3162_s23, 4  ;;  %s90_s5 = sshll.u32 %s2513_s1, 4  ;;  %s43_s24 = int_to_ptr.hbm [resolvable:$true] %s42_s24  ;;  %s91_s5 = int_to_ptr.vmem [resolvable:$true] %s90_s5 }
  0x22   :  { %47 = dma.hbm_to_vmem [thread:$0]  %s43_s24, 32, %s45_s26, [#allocation6]  }
  0x23   :  { %71 = dma.hbm_to_vmem [thread:$0]  %s67_s29, 16, %s69_s19, [#allocation8]  }
  0x24   :  { %s111_s22 = sshll.u32 %s3147_s9, 4  ;;  %s2514_s4 = smov [#allocation15]   ;;  %s112_s22 = int_to_ptr.hbm [resolvable:$true] %s111_s22 }
  0x25   :  { %93 = dma.hbm_to_vmem [thread:$0]  %s89_s30, 16, %s91_s5, [#allocation11]  }
  0x26   :  { %s113_s2 = sshll.u32 %s2514_s4, 4  ;;  %s137_s6 = sshll.u32 %s3149_s12, 4  ;;  %s114_s2 = int_to_ptr.vmem [resolvable:$true] %s113_s2  ;;  %s138_s6 = int_to_ptr.hbm [resolvable:$true] %s137_s6 }
  0x27   :  { %s2515_s23 = smov 64   ;;  %s2516_s24 = smov 4  }
  0x28   :  { %119 = dma.hbm_to_vmem [thread:$0]  %s112_s22, 1024, %s114_s2, [#allocation14], %s2515_s23, %s2515_s23, %s2516_s24  }
  0x29   :  { %s2517_s17 = smov [#allocation18]   ;;  %s2518_s25 = smov 512  }
  0x2a   :  { %s139_s10 = sshll.u32 %s2517_s17, 4  ;;  %s2519_s26 = smov 32   ;;  %s140_s10 = int_to_ptr.vmem [resolvable:$true] %s139_s10 }
  0x2b   :  { %145 = dma.hbm_to_vmem [thread:$0]  %s138_s6, 15360, %s140_s10, [#allocation17], %s2518_s25, %s2518_s25, %s2519_s26  }
  0x2c   :  { %s164_s28 = sshll.u32 %s3152_s15, 4  ;;  %s2520_s29 = smov [#allocation21]   ;;  %s165_s28 = int_to_ptr.hbm [resolvable:$true] %s164_s28 }
  0x2d   :  { %s166_s14 = sshll.u32 %s2520_s29, 4  ;;  %s167_s14 = int_to_ptr.vmem [resolvable:$true] %s166_s14 }
  0x2e   :  { %169 = dma.hbm_to_vmem [thread:$0]  %s165_s28, 128, %s167_s14, [#allocation20]  }
  0x2f   :  { %2494 = dma.done.wait [#allocation6], 32  }
  0x30   :  { %2495 = vsyncadd [#allocation6], 4294967264 }
  0x31   :  { %2496 = dma.done.wait [#allocation8], 208  }
  0x32   :  { %2497 = vsyncadd [#allocation8], 4294967088 }
  0x33   :  { %2498 = dma.done.wait [#allocation11], 32  }
  0x34   :  { %2499 = vsyncadd [#allocation11], 4294967264 }
  0x35   :  { %2500 = dma.done.wait [#allocation14], 1040  }
  0x36   :  { %2501 = vsyncadd [#allocation14], 4294966256 }
  0x37   :  { %2502 = dma.done.wait [#allocation17], 15376  }
  0x38   :  { %2503 = vsyncadd [#allocation17], 4294951920 }
  0x39   :  { %2504 = dma.done.wait [#allocation20], 256  }
  0x3a   :  { %2505 = vsyncadd [#allocation20], 4294967040  ;;  %v2521_v3 = vmov 0   ;;  %s3163_s3 = sld [smem:[#allocation28_spill]]  ;;  %v222_v6 = vld [vmem:[#allocation5] sm:$0x3]  ;;  %v260_v23 = vlaneseq }
  0x3b   :  { %2171 = vset.pattern.permute.xlu1 %v2521_v3  ;;  %2172 = vset.pattern.permute.xlu2 %v2521_v3  ;;  %v224_v7 = vperm.slane %v222_v6, 0  ;;  %v225_v8 = vperm.slane %v222_v6, 1  ;;  %v2174_v9 = vld [vmem:[#allocation2] ss:$0 sm:$0xff]  ;;  %v253_v18 = vld [vmem:[#allocation7] sm:$0xff]  ;;  %vm264_vm2 = vcmask 1041409  }
  0x3c   :  { %2173 = vset.pattern.permute.xlu0 %v2521_v3  ;;  %242 = vperm.xlu1 %2171, %v2174_v9   ;;  %v254_v19 = vld [vmem:[#allocation7 + $0x8] sm:$0xf]  ;;  %v255_v20 = vunpack.c.l.bf16 %v253_v18  ;;  %v256_v21 = vunpack.c.h.bf16 %v253_v18  ;;  %v261_v25 = vand.u32 127, %v260_v23  ;;  %vm266_vm3 = vcmask 64512   ;;  %v2144_v41 = vld [vmem:[%s3145_s7 + $0x38] sm:$0xff]   ;;  %v2141_v51 = vld [vmem:[%s3145_s7 + $0x20] sm:$0xff]  }
  0x3d   :  { %v257_v22 = vunpack.c.l.bf16 %v254_v19  ;;  %v2105_v42 = vunpack.c.h.bf16 %v2144_v41  ;;  %v2104_v43 = vunpack.c.l.bf16 %v2144_v41  ;;  %v2143_v44 = vld [vmem:[%s3145_s7 + $0x30] sm:$0xff]   ;;  %v2142_v47 = vld [vmem:[%s3145_s7 + $0x28] sm:$0xff]   ;;  %vm336_vm4 = vcmask 1041408   ;;  %v2140_v57 = vld [vmem:[%s3145_s7 + $0x18] sm:$0xff]  }
  0x3e   :  { %284 = vmatpush.msra.mxu0 %v255_v20  ;;  %304 = vmatpush.msra.mxu3 %v256_v21  ;;  %v2027_v28 = vadd.s32 4294967294, %v261_v25  ;;  %v2101_v45 = vunpack.c.h.bf16 %v2143_v44  ;;  %v2100_v46 = vunpack.c.l.bf16 %v2143_v44  ;;  %v2097_v48 = vunpack.c.h.bf16 %v2142_v47  ;;  %v2175_v49 = vld [vmem:[#allocation9] ss:$0 sm:$0xff]  ;;  %v2150_v20 = vld [vmem:[#allocation15 + $0x30] sm:$0xff]   ;;  %v2075_v23 = vld [vmem:[%s3145_s7] sm:$0xff]  }
  0x3f   :  { %324 = vmatpush.msra.mxu2 %v257_v22  ;;  %529 = vmatpush.msra.mxu1 %v2105_v42  ;;  %v2096_v50 = vunpack.c.l.bf16 %v2142_v47  ;;  %v2093_v53 = vunpack.c.h.bf16 %v2141_v51  ;;  %v2092_v55 = vunpack.c.l.bf16 %v2141_v51  ;;  %v2089_v59 = vunpack.c.h.bf16 %v2140_v57  ;;  %v2139_v1 = vld [vmem:[%s3145_s7 + $0x10] sm:$0xff]  }
  0x40   :  { %v218_v4 = vld [vmem:[%s3163_s3] sm:$0xff]  ;;  %v219_v5 = vld [vmem:[%s3163_s3 + $0x8] sm:$0xff]  ;;  %v220_v10 = vld [vmem:[%s3163_s3 + $0x10] sm:$0xff]  ;;  %489 = vmatpush.msrb.mxu3 %v2105_v42  ;;  %509 = vmatpush.msrb.mxu0 %v2105_v42  ;;  %v2088_v62 = vunpack.c.l.bf16 %v2140_v57  ;;  %v2133_v22 = vunpack.c.h.bf16 %v2150_v20  ;;  %vm852_vm9 = vcmask 654336  }
  0x41   :  { %v221_v11 = vld [vmem:[%s3163_s3 + $0x18] sm:$0xff]  ;;  %v228_v12 = vmul.f32 %v224_v7, %v218_v4  ;;  %v229_v13 = vmul.f32 %v225_v8, %v219_v5  ;;  %v230_v15 = vmul.f32 %v224_v7, %v220_v10  ;;  %530 = vmatpush.msra.mxu1 %v2104_v43  ;;  %v2085_v4 = vunpack.c.h.bf16 %v2139_v1 }
  0x42   :  { %v231_v16 = vmul.f32 %v225_v8, %v221_v11  ;;  %490 = vmatpush.msrb.mxu3 %v2104_v43  ;;  %510 = vmatpush.msrb.mxu0 %v2104_v43  ;;  %v2084_v8 = vunpack.c.l.bf16 %v2139_v1  ;;  %v2151_v9 = vld [vmem:[#allocation15 + $0x38] sm:$0xff]  }
  0x43   :  { %v232_v14 = vadd.f32 %v229_v13, %v228_v12  ;;  %531 = vmatpush.msra.mxu1 %v2101_v45  ;;  %v2137_v11 = vunpack.c.h.bf16 %v2151_v9  ;;  %v2138_v12 = vld [vmem:[%s3145_s7 + $0x8] sm:$0xff]  }
  0x44   :  { %v235_v17 = vadd.f32 %v231_v16, %v230_v15  ;;  %491 = vmatpush.msrb.mxu3 %v2101_v45  ;;  %511 = vmatpush.msrb.mxu0 %v2101_v45  ;;  %v2081_v15 = vunpack.c.h.bf16 %v2138_v12  ;;  %v2080_v19 = vunpack.c.l.bf16 %v2138_v12  ;;  %v2147_v45 = vld [vmem:[#allocation15 + $0x18] sm:$0xff]  }
  0x45   :  { %233 = vadd.xlane.f32.xlu0 %v232_v14  ;;  %532 = vmatpush.msra.mxu1 %v2100_v46 }
  0x46   :  { %492 = vmatpush.msrb.mxu3 %v2100_v46  ;;  %512 = vmatpush.msrb.mxu0 %v2100_v46  ;;  %v2121_v46 = vunpack.c.h.bf16 %v2147_v45 }
  0x47   :  { %533 = vmatpush.msra.mxu1 %v2097_v48  ;;  %553 = vmatpush.msrb.mxu2 %v2137_v11 }
  0x48   :  { %493 = vmatpush.msrb.mxu3 %v2097_v48  ;;  %513 = vmatpush.msrb.mxu0 %v2097_v48 }
  0x49   :  { %534 = vmatpush.msra.mxu1 %v2096_v50 }
  0x4a   :  { %494 = vmatpush.msrb.mxu3 %v2096_v50  ;;  %514 = vmatpush.msrb.mxu0 %v2096_v50  ;;  %v2120_v50 = vunpack.c.l.bf16 %v2147_v45 }
  0x4b   :  { %535 = vmatpush.msra.mxu1 %v2093_v53 }
  0x4c   :  { %495 = vmatpush.msrb.mxu3 %v2093_v53  ;;  %515 = vmatpush.msrb.mxu0 %v2093_v53 }
  0x4d   :  { %236 = vadd.xlane.f32.xlu0 %v235_v17  ;;  %536 = vmatpush.msra.mxu1 %v2092_v55  ;;  %v2136_v17 = vunpack.c.l.bf16 %v2151_v9 }
  0x4e   :  { %496 = vmatpush.msrb.mxu3 %v2092_v55  ;;  %516 = vmatpush.msrb.mxu0 %v2092_v55 }
  0x4f   :  { %537 = vmatpush.msra.mxu1 %v2089_v59  ;;  %554 = vmatpush.msrb.mxu2 %v2136_v17 }
  0x50   :  { %497 = vmatpush.msrb.mxu3 %v2089_v59  ;;  %517 = vmatpush.msrb.mxu0 %v2089_v59 }
  0x51   :  { %538 = vmatpush.msra.mxu1 %v2088_v62  ;;  %555 = vmatpush.msrb.mxu2 %v2133_v22 }
  0x52   :  { %498 = vmatpush.msrb.mxu3 %v2088_v62  ;;  %518 = vmatpush.msrb.mxu0 %v2088_v62 }
  0x53   :  { %539 = vmatpush.msra.mxu1 %v2085_v4 }
  0x54   :  { %499 = vmatpush.msrb.mxu3 %v2085_v4  ;;  %519 = vmatpush.msrb.mxu0 %v2085_v4 }
  0x55   :  { %540 = vmatpush.msra.mxu1 %v2084_v8 }
  0x56   :  { %500 = vmatpush.msrb.mxu3 %v2084_v8  ;;  %520 = vmatpush.msrb.mxu0 %v2084_v8  ;;  %v2107_v8 = vld [vmem:[#allocation15] sm:$0xff]  }
  0x57   :  { %541 = vmatpush.msra.mxu1 %v2081_v15  ;;  %v2109_v12 = vunpack.c.h.bf16 %v2107_v8 }
  0x58   :  { %501 = vmatpush.msrb.mxu3 %v2081_v15  ;;  %521 = vmatpush.msrb.mxu0 %v2081_v15 }
  0x59   :  { %542 = vmatpush.msra.mxu1 %v2080_v19 }
  0x5a   :  { %502 = vmatpush.msrb.mxu3 %v2080_v19  ;;  %522 = vmatpush.msrb.mxu0 %v2080_v19 }
  0xae   :  { %v243_v24 = vpop.permute.xlu1 %242 }
  0xb8   :  { %v234_v26 = vpop.xlane.xlu0 %233 }
  0xb9   :  { %v245_v27 = vadd.f32 %v243_v24, %v234_v26  ;;  %v2077_v26 = vunpack.c.h.bf16 %v2075_v23 }
  0xbb   :  { %vm247_vm0 = vcmp.ge.f32.partialorder %v245_v27, 0.0  ;;  %v249_v29 = vmul.f32 0.2, %v245_v27  ;;  %503 = vmatpush.msrb.mxu3 %v2077_v26  ;;  %523 = vmatpush.msrb.mxu0 %v2077_v26 }
  0xbc   :  { %543 = vmatpush.msra.mxu1 %v2077_v26 }
  0xbd   :  { %v251_v30 = vsel %vm247_vm0, %v245_v27, %v249_v29 }
  0xbe   :  { %v2028_v31 = vperm.slane %v251_v30, %v2027_v28  ;;  %v262_v36 = vperm.slane %v251_v30, %v261_v25  ;;  %v2076_v30 = vunpack.c.l.bf16 %v2075_v23 }
  0xc0   :  { %v237_v32 = vpop.xlane.xlu0 %236  ;;  %504 = vmatpush.msrb.mxu3 %v2076_v30  ;;  %524 = vmatpush.msrb.mxu0 %v2076_v30 }
  0xc1   :  { %v246_v33 = vadd.f32 %v243_v24, %v237_v32  ;;  %544 = vmatpush.msra.mxu1 %v2076_v30 }
  0xc3   :  { %vm248_vm1 = vcmp.ge.f32.partialorder %v246_v33, 0.0  ;;  %v250_v34 = vmul.f32 0.2, %v246_v33 }
  0xc5   :  { %v252_v35 = vsel %vm248_vm1, %v246_v33, %v250_v34 }
  0xc6   :  { %v263_v37 = vperm.slane %v252_v35, %v261_v25  ;;  %v2029_v38 = vperm.slane %v252_v35, %v2027_v28  ;;  %v2132_v28 = vunpack.c.l.bf16 %v2150_v20 }
  0xc8   :  { %v265_v39 = vsel %vm264_vm2, %v263_v37, %v262_v36  ;;  %v2674_v40 = vsel %vm264_vm2, %v2029_v38, %v2028_v31  ;;  %v2149_v31 = vld [vmem:[#allocation15 + $0x28] sm:$0xff]   ;;  %556 = vmatpush.msrb.mxu2 %v2132_v28 }
  0xc9   :  { %2046 = vmatmul.msk.f32.vlgmr.msra.gmra.mxu0 %vm266_vm3, %v265_v39  ;;  %2047 = vmatmul.msk.f32.vlgmr.msra.gmra.mxu3 %vm266_vm3, %v265_v39  ;;  %v2129_v33 = vunpack.c.h.bf16 %v2149_v31  ;;  %v2128_v36 = vunpack.c.l.bf16 %v2149_v31 }
  0xca   :  { %2048 = vmatmul.msk.f32.vlgmr.msra.gmra.mxu2 %vm266_vm3, %v265_v39  ;;  %573 = vmatpush.msra.mxu3 %v2137_v11  ;;  %v2148_v39 = vld [vmem:[#allocation15 + $0x20] sm:$0xff]  }
  0xcb   :  { %557 = vmatpush.msrb.mxu2 %v2129_v33  ;;  %593 = vmatpush.msra.mxu0 %v2137_v11  ;;  %v2125_v41 = vunpack.c.h.bf16 %v2148_v39  ;;  %v2124_v43 = vunpack.c.l.bf16 %v2148_v39 }
  0xcc   :  { %574 = vmatpush.msra.mxu3 %v2136_v17 }
  0xcd   :  { %558 = vmatpush.msrb.mxu2 %v2128_v36  ;;  %594 = vmatpush.msra.mxu0 %v2136_v17 }
  0xce   :  { %575 = vmatpush.msra.mxu3 %v2133_v22 }
  0xcf   :  { %559 = vmatpush.msrb.mxu2 %v2125_v41  ;;  %595 = vmatpush.msra.mxu0 %v2133_v22 }
  0xd0   :  { %576 = vmatpush.msra.mxu3 %v2132_v28 }
  0xd1   :  { %560 = vmatpush.msrb.mxu2 %v2124_v43  ;;  %596 = vmatpush.msra.mxu0 %v2132_v28  ;;  %v2176_v28 = vld [vmem:[#allocation10] ss:$0 sm:$0xff] }
  0xd2   :  { %577 = vmatpush.msra.mxu3 %v2129_v33 }
  0xd3   :  { %561 = vmatpush.msrb.mxu2 %v2121_v46  ;;  %597 = vmatpush.msra.mxu0 %v2129_v33 }
  0xd4   :  { %578 = vmatpush.msra.mxu3 %v2128_v36 }
  0xd5   :  { %562 = vmatpush.msrb.mxu2 %v2120_v50  ;;  %598 = vmatpush.msra.mxu0 %v2128_v36 }
  0xd6   :  { %579 = vmatpush.msra.mxu3 %v2125_v41 }
  0xd7   :  { %599 = vmatpush.msra.mxu0 %v2125_v41 }
  0xd8   :  { %580 = vmatpush.msra.mxu3 %v2124_v43 }
  0xd9   :  { %600 = vmatpush.msra.mxu0 %v2124_v43  ;;  %v2178_v43 = vld [vmem:[#allocation13] ss:$0 sm:$0xff] }
  0xda   :  { %581 = vmatpush.msra.mxu3 %v2121_v46 }
  0xdb   :  { %601 = vmatpush.msra.mxu0 %v2121_v46 }
  0xdc   :  { %582 = vmatpush.msra.mxu3 %v2120_v50 }
  0xdd   :  { %602 = vmatpush.msra.mxu0 %v2120_v50 }
 0x146   :  { %v286_v52 = vpop.f32.mrf.mxu0 }
 0x147   :  { %v2688_v54 = vadd.f32 %v2175_v49, %v286_v52 }
 0x149   :  { %v337_v56 = vsel %vm336_vm4, %v2688_v54, 0.0 }
 0x14a   :  { %v338_v58 = vrot.slane %v337_v56, 4 }
 0x14c   :  { %v339_v60 = vadd.f32 %v338_v58, %v337_v56  ;;  %v306_v61 = vpop.f32.mrf.mxu3 }
 0x14d   :  { %v2695_v63 = vadd.f32 %v2175_v49, %v306_v61  ;;  %v326_v0 = vpop.f32.mrf.mxu2 }
 0x14e   :  { %v340_v2 = vrot.slane %v339_v60, 2  ;;  %v2700_v3 = vadd.f32 %v2175_v49, %v326_v0 }
 0x14f   :  { %v345_v5 = vsel %vm336_vm4, %v2695_v63, 0.0 }
 0x150   :  { %v346_v6 = vrot.slane %v345_v5, 4  ;;  %v353_v7 = vsel %vm336_vm4, %v2700_v3, 0.0  ;;  %v341_v13 = vadd.f32 %v340_v2, %v339_v60 }
 0x151   :  { %v354_v10 = vrot.slane %v353_v7, 4 }
 0x152   :  { %v347_v14 = vadd.f32 %v346_v6, %v345_v5  ;;  %v342_v24 = vrot.slane %v341_v13, 1 }
 0x153   :  { %v355_v16 = vadd.f32 %v354_v10, %v353_v7 }
 0x154   :  { %v348_v18 = vrot.slane %v347_v14, 2  ;;  %v343_v34 = vadd.f32 %v342_v24, %v341_v13 }
 0x155   :  { %v356_v21 = vrot.slane %v355_v16, 2 }
 0x156   :  { %v349_v25 = vadd.f32 %v348_v18, %v347_v14 }
 0x157   :  { %v357_v27 = vadd.f32 %v356_v21, %v355_v16  ;;  %v2108_v16 = vunpack.c.l.bf16 %v2107_v8 }
 0x158   :  { %v350_v29 = vrot.slane %v349_v25, 1 }
 0x159   :  { %v358_v32 = vrot.slane %v357_v27, 1 }
 0x15a   :  { %v351_v35 = vadd.f32 %v350_v29, %v349_v25 }
 0x15b   :  { %v359_v38 = vadd.f32 %v358_v32, %v357_v27  ;;  %v2177_v32 = vld [vmem:[#allocation12] ss:$0 sm:$0xff] }
 0x15c   :  { %v352_v37 = vadd.f32 %v351_v35, %v343_v34 }
 0x15e   :  { %v360_v42 = vadd.f32 %v359_v38, %v352_v37 }
 0x160   :  { %v361_v44 = vmul.f32 0.16666667, %v360_v42 }
 0x162   :  { %v2713_v47 = vsub.f32 %v2688_v54, %v361_v44  ;;  %v2716_v48 = vsub.f32 %v2695_v63, %v361_v44  ;;  %v2719_v49 = vsub.f32 %v2700_v3, %v361_v44  ;;  %v2146_v54 = vld [vmem:[#allocation15 + $0x10] sm:$0xff]   ;;  %v2145_v63 = vld [vmem:[#allocation15 + $0x8] sm:$0xff]  }
 0x163   :  { %v2117_v55 = vunpack.c.h.bf16 %v2146_v54  ;;  %v2116_v62 = vunpack.c.l.bf16 %v2146_v54  ;;  %v2113_v3 = vunpack.c.h.bf16 %v2145_v63  ;;  %v2112_v7 = vunpack.c.l.bf16 %v2145_v63 }
 0x164   :  { %v363_v51 = vmul.f32 %v2713_v47, %v2713_v47  ;;  %v373_v52 = vmul.f32 %v2716_v48, %v2716_v48  ;;  %v383_v53 = vmul.f32 %v2719_v49, %v2719_v49  ;;  %v408_v31 = vmul.f32 %v2176_v28, %v2713_v47 }
 0x165   :  { %563 = vmatpush.msrb.mxu2 %v2117_v55  ;;  %583 = vmatpush.msra.mxu3 %v2117_v55  ;;  %v415_v33 = vmul.f32 %v2176_v28, %v2716_v48  ;;  %v418_v34 = vmul.f32 %v2176_v28, %v2719_v49 }
 0x166   :  { %v364_v56 = vsel %vm336_vm4, %v363_v51, 0.0  ;;  %v374_v57 = vsel %vm336_vm4, %v373_v52, 0.0  ;;  %v384_v58 = vsel %vm336_vm4, %v383_v53, 0.0  ;;  %603 = vmatpush.msra.mxu0 %v2117_v55 }
 0x167   :  { %v365_v59 = vrot.slane %v364_v56, 4  ;;  %v375_v60 = vrot.slane %v374_v57, 4  ;;  %v385_v61 = vrot.slane %v384_v58, 4  ;;  %564 = vmatpush.msrb.mxu2 %v2116_v62  ;;  %584 = vmatpush.msra.mxu3 %v2116_v62 }
 0x168   :  { %604 = vmatpush.msra.mxu0 %v2116_v62 }
 0x169   :  { %v366_v0 = vadd.f32 %v365_v59, %v364_v56  ;;  %v376_v1 = vadd.f32 %v375_v60, %v374_v57  ;;  %v386_v2 = vadd.f32 %v385_v61, %v384_v58  ;;  %565 = vmatpush.msrb.mxu2 %v2113_v3  ;;  %585 = vmatpush.msra.mxu3 %v2113_v3 }
 0x16a   :  { %605 = vmatpush.msra.mxu0 %v2113_v3 }
 0x16b   :  { %v367_v4 = vrot.slane %v366_v0, 2  ;;  %v377_v5 = vrot.slane %v376_v1, 2  ;;  %v387_v6 = vrot.slane %v386_v2, 2  ;;  %566 = vmatpush.msrb.mxu2 %v2112_v7  ;;  %586 = vmatpush.msra.mxu3 %v2112_v7 }
 0x16c   :  { %606 = vmatpush.msra.mxu0 %v2112_v7 }
 0x16d   :  { %v368_v9 = vadd.f32 %v367_v4, %v366_v0  ;;  %v378_v10 = vadd.f32 %v377_v5, %v376_v1  ;;  %v388_v11 = vadd.f32 %v387_v6, %v386_v2  ;;  %567 = vmatpush.msrb.mxu2 %v2109_v12  ;;  %587 = vmatpush.msra.mxu3 %v2109_v12  ;;  %v2180_v4 = vld [vmem:[#allocation3] ss:$0 sm:$0xff]  ;;  %v770_v6 = vld [vmem:[#allocation18 + $0x130] sm:$0xff] }
 0x16e   :  { %607 = vmatpush.msra.mxu0 %v2109_v12  ;;  %v768_v5 = vld [vmem:[#allocation18 + $0x120] sm:$0xff]  ;;  %v766_v12 = vld [vmem:[#allocation18 + $0x110] sm:$0xff] }
 0x16f   :  { %v369_v13 = vrot.slane %v368_v9, 1  ;;  %v379_v14 = vrot.slane %v378_v10, 1  ;;  %v389_v15 = vrot.slane %v388_v11, 1  ;;  %568 = vmatpush.msrb.mxu2 %v2108_v16  ;;  %588 = vmatpush.msra.mxu3 %v2108_v16  ;;  %v844_v7 = vunpack.c.l.bf16 %v768_v5 }
 0x170   :  { %608 = vmatpush.msra.mxu0 %v2108_v16  ;;  %v845_v8 = vunpack.c.h.bf16 %v768_v5  ;;  %v841_v16 = vunpack.c.h.bf16 %v766_v12 }
 0x171   :  { %v370_v17 = vadd.f32 %v369_v13, %v368_v9  ;;  %v380_v18 = vadd.f32 %v379_v14, %v378_v10  ;;  %v390_v20 = vadd.f32 %v389_v15, %v388_v11  ;;  %v848_v9 = vunpack.c.l.bf16 %v770_v6  ;;  %v764_v11 = vld [vmem:[#allocation18 + $0x100] sm:$0xff]  ;;  %862 = vmatpush.msrb.mxu1 %v844_v7  ;;  %v769_v7 = vld [vmem:[#allocation18 + $0x128] sm:$0xff] }
 0x172   :  { %v849_v10 = vunpack.c.h.bf16 %v770_v6  ;;  %882 = vmatpush.msra.mxu2 %v845_v8  ;;  %v836_v13 = vunpack.c.l.bf16 %v764_v11  ;;  %v837_v14 = vunpack.c.h.bf16 %v764_v11  ;;  %v840_v15 = vunpack.c.l.bf16 %v766_v12  ;;  %v1080_v8 = vld [vmem:[#allocation18 + $0x260] sm:$0xff] }
 0x173   :  { %v381_v19 = vadd.f32 %v380_v18, %v370_v17  ;;  %v760_v17 = vld [vmem:[#allocation18 + $0xe0] sm:$0xff]  ;;  %v762_v18 = vld [vmem:[#allocation18 + $0xf0] sm:$0xff]  ;;  %v1156_v11 = vunpack.c.l.bf16 %v1080_v8  ;;  %v1157_v12 = vunpack.c.h.bf16 %v1080_v8 }
 0x174   :  { %863 = vmatpush.msrb.mxu1 %v836_v13  ;;  %883 = vmatpush.msra.mxu2 %v837_v14  ;;  %v765_v14 = vld [vmem:[#allocation18 + $0x108] sm:$0xff] }
 0x175   :  { %v391_v21 = vadd.f32 %v390_v20, %v381_v19  ;;  %v828_v19 = vunpack.c.l.bf16 %v760_v17  ;;  %v829_v20 = vunpack.c.h.bf16 %v760_v17  ;;  %v839_v17 = vunpack.c.h.bf16 %v765_v14 }
 0x177   :  { %v392_v22 = vmul.f32 0.16666667, %v391_v21  ;;  %v832_v21 = vunpack.c.l.bf16 %v762_v18  ;;  %864 = vmatpush.msrb.mxu1 %v828_v19  ;;  %884 = vmatpush.msra.mxu2 %v829_v20 }
 0x179   :  { %v393_v23 = vadd.f32 1e-05, %v392_v22  ;;  %v833_v22 = vunpack.c.h.bf16 %v762_v18 }
 0x17b   :  { %2182 = vrsqrt.f32 %v393_v23  ;;  %vm400_vm6 = vweird.f32 %v393_v23 }
 0x181   :  { %v2183_v24 = vpop.eup %2182 }
 0x182   :  { %v395_v25 = vmul.f32 %v2183_v24, %v393_v23  ;;  %vm401_vm5 = vweird.f32 %v2183_v24  ;;  %v756_v23 = vld [vmem:[#allocation18 + $0xc0] sm:$0xff] }
 0x183   :  { %vm402_vm7 = vmor %vm400_vm6, %vm401_vm5 }
 0x184   :  { %v396_v26 = vmul.f32 %v2183_v24, %v395_v25  ;;  %v820_v25 = vunpack.c.l.bf16 %v756_v23 }
 0x186   :  { %v397_v27 = vmul.f32 0.5, %v396_v26  ;;  %v821_v26 = vunpack.c.h.bf16 %v756_v23  ;;  %865 = vmatpush.msrb.mxu1 %v820_v25  ;;  %v1072_v23 = vld [vmem:[#allocation18 + $0x220] sm:$0xff] }
 0x188   :  { %v398_v29 = vsub.f32 1.5, %v397_v27  ;;  %885 = vmatpush.msra.mxu2 %v821_v26 }
 0x18a   :  { %v399_v30 = vmul.f32 %v2183_v24, %v398_v29  ;;  %v752_v29 = vld [vmem:[#allocation18 + $0xa0] sm:$0xff] }
 0x18c   :  { %v403_v35 = vsel %vm402_vm7, %v2183_v24, %v399_v30  ;;  %v758_v24 = vld [vmem:[#allocation18 + $0xd0] sm:$0xff] }
 0x18d   :  { %v409_v36 = vmul.f32 %v408_v31, %v403_v35  ;;  %v416_v37 = vmul.f32 %v415_v33, %v403_v35  ;;  %v419_v38 = vmul.f32 %v418_v34, %v403_v35  ;;  %v825_v27 = vunpack.c.h.bf16 %v758_v24  ;;  %v754_v30 = vld [vmem:[#allocation18 + $0xb0] sm:$0xff]  ;;  %v748_v35 = vld [vmem:[#allocation18 + $0x80] sm:$0xff] }
 0x18e   :  { %v824_v28 = vunpack.c.l.bf16 %v758_v24  ;;  %v812_v31 = vunpack.c.l.bf16 %v752_v29  ;;  %v816_v33 = vunpack.c.l.bf16 %v754_v30  ;;  %v817_v34 = vunpack.c.h.bf16 %v754_v30  ;;  %v1068_v30 = vld [vmem:[#allocation18 + $0x200] sm:$0xff] }
 0x18f   :  { %v2733_v39 = vadd.f32 %v2177_v32, %v409_v36  ;;  %v2735_v41 = vadd.f32 %v2177_v32, %v416_v37  ;;  %v2737_v42 = vadd.f32 %v2177_v32, %v419_v38  ;;  %v813_v32 = vunpack.c.h.bf16 %v752_v29  ;;  %v750_v36 = vld [vmem:[#allocation18 + $0x90] sm:$0xff]  ;;  %v757_v29 = vld [vmem:[#allocation18 + $0xc8] sm:$0xff] }
 0x190   :  { %866 = vmatpush.msrb.mxu1 %v812_v31  ;;  %v804_v37 = vunpack.c.l.bf16 %v748_v35  ;;  %v805_v38 = vunpack.c.h.bf16 %v748_v35  ;;  %v823_v35 = vunpack.c.h.bf16 %v757_v29 }
 0x191   :  { %505 = vmatmul.f32.vlgmr.msrb.gmra.mxu3 %v2733_v39  ;;  %525 = vmatmul.f32.vlgmr.msrb.gmra.mxu0 %v2735_v41 }
 0x192   :  { %545 = vmatmul.f32.vlgmr.msra.gmra.mxu1 %v2737_v42  ;;  %569 = vmatmul.f32.vlgmr.msrb.gmra.mxu2 %v2733_v39 }
 0x193   :  { %942 = vmatpush.msrb.mxu3 %v848_v9  ;;  %962 = vmatpush.msrb.mxu0 %v849_v10  ;;  %v846_v9 = vunpack.c.l.bf16 %v769_v7  ;;  %v847_v10 = vunpack.c.h.bf16 %v769_v7 }
 0x194   :  { %886 = vmatpush.msra.mxu2 %v813_v32  ;;  %867 = vmatpush.msrb.mxu1 %v804_v37  ;;  %v1133_v37 = vunpack.c.h.bf16 %v1068_v30 }
 0x195   :  { %943 = vmatpush.msrb.mxu3 %v840_v15  ;;  %963 = vmatpush.msrb.mxu0 %v841_v16  ;;  %v1076_v15 = vld [vmem:[#allocation18 + $0x240] sm:$0xff]  ;;  %v838_v16 = vunpack.c.l.bf16 %v765_v14 }
 0x196   :  { %887 = vmatpush.msra.mxu2 %v805_v38  ;;  %v1148_v18 = vunpack.c.l.bf16 %v1076_v15  ;;  %v1149_v19 = vunpack.c.h.bf16 %v1076_v15  ;;  %v753_v38 = vld [vmem:[#allocation18 + $0xa8] sm:$0xff]  ;;  %v1048_v14 = vld [vmem:[#allocation18 + $0x160] sm:$0xff] }
 0x197   :  { %944 = vmatpush.msrb.mxu3 %v832_v21  ;;  %964 = vmatpush.msrb.mxu0 %v833_v22  ;;  %v761_v22 = vld [vmem:[#allocation18 + $0xe8] sm:$0xff] }
 0x198   :  { %v830_v25 = vunpack.c.l.bf16 %v761_v22  ;;  %v831_v26 = vunpack.c.h.bf16 %v761_v22  ;;  %v1092_v22 = vunpack.c.l.bf16 %v1048_v14 }
 0x199   :  { %589 = vmatmul.f32.vlgmr.msra.gmra.mxu3 %v2735_v41  ;;  %609 = vmatmul.f32.vlgmr.msra.gmra.mxu0 %v2737_v42 }
 0x19a   :  { %965 = vmatpush.msrb.mxu0 %v825_v27  ;;  %945 = vmatpush.msrb.mxu3 %v824_v28  ;;  %v1140_v27 = vunpack.c.l.bf16 %v1072_v23  ;;  %v1141_v28 = vunpack.c.h.bf16 %v1072_v23  ;;  %v1093_v23 = vunpack.c.h.bf16 %v1048_v14 }
 0x19c   :  { %946 = vmatpush.msrb.mxu3 %v816_v33  ;;  %966 = vmatpush.msrb.mxu0 %v817_v34  ;;  %v822_v33 = vunpack.c.l.bf16 %v757_v29 }
 0x20e   :  { %v526_v44 = vpop.f32.mrf.mxu0 }
 0x20f   :  { %v527_v45 = vadd.f32 %v2178_v43, %v526_v44  ;;  %v546_v55 = vpop.f32.mrf.mxu1  ;;  %v809_v44 = vunpack.c.h.bf16 %v750_v36 }
 0x210   :  { %v547_v57 = vadd.f32 %v2178_v43, %v546_v55 }
 0x211   :  { %v652_v46 = vmul.f32 %v527_v45, %v2735_v41  ;;  %v648_v47 = vmul.f32 %v527_v45, %v2733_v39  ;;  %v656_v53 = vmul.f32 %v527_v45, %v2737_v42  ;;  %v744_v45 = vld [vmem:[#allocation18 + $0x60] sm:$0xff]  ;;  %967 = vmatpush.msrb.mxu0 %v809_v44 }
 0x212   :  { %v682_v60 = vmul.f32 %v547_v57, %v2733_v39  ;;  %v686_v0 = vmul.f32 %v547_v57, %v2735_v41  ;;  %v690_v2 = vmul.f32 %v547_v57, %v2737_v42 }
 0x213   :  { %v653_v48 = vsel %vm336_vm4, %v652_v46, 0.0  ;;  %v649_v49 = vsel %vm336_vm4, %v648_v47, 0.0  ;;  %v657_v58 = vsel %vm336_vm4, %v656_v53, 0.0  ;;  %v746_v46 = vld [vmem:[#allocation18 + $0x70] sm:$0xff]  ;;  %v796_v47 = vunpack.c.l.bf16 %v744_v45 }
 0x214   :  { %654 = vadd.xlane.f32.xlu2 %v653_v48  ;;  %650 = vadd.xlane.f32.xlu0 %v649_v49  ;;  %v506_v50 = vpop.f32.mrf.mxu3  ;;  %v683_v62 = vsel %vm336_vm4, %v682_v60, 0.0  ;;  %v687_v1 = vsel %vm336_vm4, %v686_v0, 0.0  ;;  %v691_v3 = vsel %vm336_vm4, %v690_v2, 0.0  ;;  %v797_v48 = vunpack.c.h.bf16 %v744_v45  ;;  %v738_v60 = vld [vmem:[#allocation18 + $0x30] sm:$0xff] }
 0x215   :  { %v507_v51 = vadd.f32 %v2178_v43, %v506_v50  ;;  %v808_v43 = vunpack.c.l.bf16 %v750_v36  ;;  %v800_v49 = vunpack.c.l.bf16 %v746_v46  ;;  %v801_v50 = vunpack.c.h.bf16 %v746_v46  ;;  %868 = vmatpush.msrb.mxu1 %v796_v47  ;;  %v734_v2 = vld [vmem:[#allocation18 + $0x10] sm:$0xff] }
 0x216   :  { %888 = vmatpush.msra.mxu2 %v797_v48  ;;  %v785_v0 = vunpack.c.h.bf16 %v738_v60  ;;  %v776_v5 = vunpack.c.l.bf16 %v734_v2  ;;  %v777_v6 = vunpack.c.h.bf16 %v734_v2  ;;  %v1132_v36 = vunpack.c.l.bf16 %v1068_v30 }
 0x217   :  { %v614_v52 = vmul.f32 %v507_v51, %v2733_v39  ;;  %v618_v54 = vmul.f32 %v507_v51, %v2735_v41  ;;  %v622_v61 = vmul.f32 %v507_v51, %v2737_v42  ;;  %947 = vmatpush.msrb.mxu3 %v808_v43  ;;  %v740_v51 = vld [vmem:[#allocation18 + $0x40] sm:$0xff]  ;;  %968 = vmatpush.msrb.mxu0 %v801_v50  ;;  %v814_v47 = vunpack.c.l.bf16 %v753_v38 }
 0x218   :  { %v788_v55 = vunpack.c.l.bf16 %v740_v51  ;;  %v1064_v43 = vld [vmem:[#allocation18 + $0x1e0] sm:$0xff] }
 0x219   :  { %v615_v56 = vsel %vm336_vm4, %v614_v52, 0.0  ;;  %v619_v59 = vsel %vm336_vm4, %v618_v54, 0.0  ;;  %v623_v63 = vsel %vm336_vm4, %v622_v61, 0.0  ;;  %v742_v52 = vld [vmem:[#allocation18 + $0x50] sm:$0xff]  ;;  %948 = vmatpush.msrb.mxu3 %v800_v49  ;;  %v815_v49 = vunpack.c.h.bf16 %v753_v38 }
 0x21a   :  { %616 = vadd.xlane.f32.xlu1 %v615_v56  ;;  %v789_v56 = vunpack.c.h.bf16 %v740_v51  ;;  %v793_v57 = vunpack.c.h.bf16 %v742_v52  ;;  %869 = vmatpush.msrb.mxu1 %v788_v55  ;;  %v1124_v50 = vunpack.c.l.bf16 %v1064_v43  ;;  %v1125_v51 = vunpack.c.h.bf16 %v1064_v43 }
 0x21c   :  { %658 = vadd.xlane.f32.xlu0 %v657_v58  ;;  %620 = vadd.xlane.f32.xlu2 %v619_v59  ;;  %v792_v58 = vunpack.c.l.bf16 %v742_v52  ;;  %v736_v59 = vld [vmem:[#allocation18 + $0x20] sm:$0xff]  ;;  %v749_v52 = vld [vmem:[#allocation18 + $0x88] sm:$0xff] }
 0x21d   :  { %889 = vmatpush.msra.mxu2 %v789_v56  ;;  %v780_v61 = vunpack.c.l.bf16 %v736_v59  ;;  %969 = vmatpush.msrb.mxu0 %v793_v57  ;;  %v807_v55 = vunpack.c.h.bf16 %v749_v52 }
 0x21e   :  { %949 = vmatpush.msrb.mxu3 %v792_v58 }
 0x21f   :  { %870 = vmatpush.msrb.mxu1 %v780_v61  ;;  %970 = vmatpush.msrb.mxu0 %v785_v0  ;;  %v745_v61 = vld [vmem:[#allocation18 + $0x68] sm:$0xff] }
 0x220   :  { %v798_v0 = vunpack.c.l.bf16 %v745_v61 }
 0x221   :  { %971 = vmatpush.msrb.mxu0 %v777_v6 }
 0x223   :  { %1193 = vmatpush.msra.mxu0 %v1157_v12 }
 0x224   :  { %684 = vadd.xlane.f32.xlu0 %v683_v62  ;;  %624 = vadd.xlane.f32.xlu2 %v623_v63  ;;  %v781_v62 = vunpack.c.h.bf16 %v736_v59  ;;  %v784_v63 = vunpack.c.l.bf16 %v738_v60 }
 0x225   :  { %1194 = vmatpush.msra.mxu0 %v1149_v19 }
 0x226   :  { %890 = vmatpush.msra.mxu2 %v781_v62  ;;  %950 = vmatpush.msrb.mxu3 %v784_v63  ;;  %v1056_v62 = vld [vmem:[#allocation18 + $0x1a0] sm:$0xff] }
 0x227   :  { %1195 = vmatpush.msra.mxu0 %v1141_v28  ;;  %v1108_v2 = vunpack.c.l.bf16 %v1056_v62 }
 0x228   :  { %951 = vmatpush.msrb.mxu3 %v776_v5  ;;  %v1052_v5 = vld [vmem:[#allocation18 + $0x180] sm:$0xff] }
 0x229   :  { %1196 = vmatpush.msra.mxu0 %v1133_v37  ;;  %v1101_v12 = vunpack.c.h.bf16 %v1052_v5 }
 0x22a   :  { %1173 = vmatpush.msra.mxu3 %v1156_v11  ;;  %v1100_v11 = vunpack.c.l.bf16 %v1052_v5 }
 0x22b   :  { %1197 = vmatpush.msra.mxu0 %v1125_v51 }
 0x22c   :  { %688 = vadd.xlane.f32.xlu0 %v687_v1  ;;  %v732_v1 = vld [vmem:[#allocation18] sm:$0xff]  ;;  %1174 = vmatpush.msra.mxu3 %v1148_v18 }
 0x22e   :  { %1175 = vmatpush.msra.mxu3 %v1140_v27 }
 0x230   :  { %1176 = vmatpush.msra.mxu3 %v1132_v36 }
 0x232   :  { %1177 = vmatpush.msra.mxu3 %v1124_v50  ;;  %v610_v50 = vpop.f32.mrf.mxu0 }
 0x234   :  { %692 = vadd.xlane.f32.xlu0 %v691_v3  ;;  %v772_v3 = vunpack.c.l.bf16 %v732_v1 }
 0x236   :  { %871 = vmatpush.msrb.mxu1 %v772_v3  ;;  %v1109_v3 = vunpack.c.h.bf16 %v1056_v62 }
 0x238   :  { %902 = vmatpush.msra.mxu1 %v846_v9 }
 0x23a   :  { %903 = vmatpush.msra.mxu1 %v838_v16 }
 0x23c   :  { %719 = vperm.xlu2 %2172, %v2180_v4   ;;  %v773_v4 = vunpack.c.h.bf16 %v732_v1  ;;  %904 = vmatpush.msra.mxu1 %v830_v25  ;;  %v799_v1 = vunpack.c.h.bf16 %v745_v61  ;;  %v1044_v25 = vld [vmem:[#allocation18 + $0x140] sm:$0xff] }
 0x23d   :  { %v1084_v30 = vunpack.c.l.bf16 %v1044_v25 }
 0x23e   :  { %891 = vmatpush.msra.mxu2 %v773_v4  ;;  %905 = vmatpush.msra.mxu1 %v822_v33  ;;  %v741_v4 = vld [vmem:[#allocation18 + $0x48] sm:$0xff] }
 0x23f   :  { %v790_v9 = vunpack.c.l.bf16 %v741_v4 }
 0x240   :  { %922 = vmatpush.msrb.mxu2 %v847_v10  ;;  %906 = vmatpush.msra.mxu1 %v814_v47  ;;  %v791_v10 = vunpack.c.h.bf16 %v741_v4 }
 0x242   :  { %923 = vmatpush.msrb.mxu2 %v839_v17 }
 0x244   :  { %924 = vmatpush.msrb.mxu2 %v831_v26 }
 0x246   :  { %925 = vmatpush.msrb.mxu2 %v823_v35 }
 0x248   :  { %926 = vmatpush.msrb.mxu2 %v815_v49  ;;  %v590_v49 = vpop.f32.mrf.mxu3 }
 0x24a   :  { %927 = vmatpush.msrb.mxu2 %v807_v55 }
 0x24c   :  { %928 = vmatpush.msrb.mxu2 %v799_v1 }
 0x24e   :  { %929 = vmatpush.msrb.mxu2 %v791_v10 }
 0x287   :  { %v2763_v53 = vpop.xlane.xlu2 %654  ;;  %v2765_v54 = vpop.xlane.xlu0 %650 }
 0x288   :  { %v660_v13 = vmax.f32 %v2765_v54, %v2763_v53 }
 0x28d   :  { %v617_v44 = vpop.xlane.xlu1 %616 }
 0x28f   :  { %v659_v20 = vpop.xlane.xlu0 %658  ;;  %v2769_v21 = vpop.xlane.xlu2 %620 }
 0x290   :  { %v661_v24 = vmax.f32 %v660_v13, %v659_v20  ;;  %v626_v48 = vmax.f32 %v617_v44, %v2769_v21  ;;  %v737_v13 = vld [vmem:[#allocation18 + $0x28] sm:$0xff] }
 0x291   :  { %v782_v18 = vunpack.c.l.bf16 %v737_v13 }
 0x292   :  { %v662_v31 = vsub.f32 %v2765_v54, %v661_v24  ;;  %v665_v32 = vsub.f32 %v2763_v53, %v661_v24  ;;  %v668_v34 = vsub.f32 %v659_v20, %v661_v24  ;;  %v1060_v53 = vld [vmem:[#allocation18 + $0x1c0] sm:$0xff]  ;;  %v806_v54 = vunpack.c.l.bf16 %v749_v52  ;;  %v733_v24 = vld [vmem:[#allocation18 + $0x8] sm:$0xff] }
 0x293   :  { %v1116_v56 = vunpack.c.l.bf16 %v1060_v53  ;;  %v1117_v60 = vunpack.c.h.bf16 %v1060_v53  ;;  %v774_v27 = vunpack.c.l.bf16 %v733_v24  ;;  %v775_v28 = vunpack.c.h.bf16 %v733_v24  ;;  %v1078_v24 = vld [vmem:[#allocation18 + $0x250] sm:$0xff] }
 0x294   :  { %v663_v45 = vmul.f32 1.442695, %v662_v31  ;;  %v666_v46 = vmul.f32 1.442695, %v665_v32  ;;  %v669_v57 = vmul.f32 1.442695, %v668_v34  ;;  %907 = vmatpush.msra.mxu1 %v806_v54  ;;  %v1085_v31 = vunpack.c.h.bf16 %v1044_v25 }
 0x295   :  { %1178 = vmatpush.msra.mxu3 %v1116_v56  ;;  %1198 = vmatpush.msra.mxu0 %v1117_v60 }
 0x296   :  { %2184 = vpow2.f32 %v663_v45  ;;  %908 = vmatpush.msra.mxu1 %v798_v0 }
 0x297   :  { %2186 = vpow2.f32 %v666_v46  ;;  %v2774_v58 = vpop.xlane.xlu0 %684  ;;  %v625_v59 = vpop.xlane.xlu2 %624  ;;  %1179 = vmatpush.msra.mxu3 %v1108_v2  ;;  %1199 = vmatpush.msra.mxu0 %v1109_v3  ;;  %v2179_v46 = vld [vmem:[#allocation16] ss:$0 sm:$0xff] }
 0x298   :  { %v627_v63 = vmax.f32 %v626_v48, %v625_v59  ;;  %2188 = vpow2.f32 %v669_v57  ;;  %909 = vmatpush.msra.mxu1 %v790_v9  ;;  %v570_v48 = vpop.f32.mrf.mxu2  ;;  %v2780_v55 = vadd.f32 %v2179_v46, %v590_v49  ;;  %v2783_v62 = vadd.f32 %v2179_v46, %v610_v50 }
 0x299   :  { %1180 = vmatpush.msra.mxu3 %v1100_v11  ;;  %1200 = vmatpush.msra.mxu0 %v1101_v12  ;;  %v2778_v54 = vadd.f32 %v2179_v46, %v570_v48  ;;  %v755_v48 = vld [vmem:[#allocation18 + $0xb8] sm:$0xff] }
 0x29a   :  { %v628_v6 = vsub.f32 %v617_v44, %v627_v63  ;;  %v631_v7 = vsub.f32 %v2769_v21, %v627_v63  ;;  %v634_v8 = vsub.f32 %v625_v59, %v627_v63  ;;  %v783_v21 = vunpack.c.h.bf16 %v737_v13  ;;  %910 = vmatpush.msra.mxu1 %v782_v18 }
 0x29b   :  { %1181 = vmatpush.msra.mxu3 %v1092_v22  ;;  %1201 = vmatpush.msra.mxu0 %v1093_v23 }
 0x29c   :  { %v2185_v15 = vpop.eup %2184  ;;  %v629_v16 = vmul.f32 1.442695, %v628_v6  ;;  %v632_v17 = vmul.f32 1.442695, %v631_v7  ;;  %v635_v20 = vmul.f32 1.442695, %v634_v8  ;;  %930 = vmatpush.msrb.mxu2 %v783_v21  ;;  %911 = vmatpush.msra.mxu1 %v774_v27 }
 0x29d   :  { %v2187_v19 = vpop.eup %2186  ;;  %1182 = vmatpush.msra.mxu3 %v1084_v30  ;;  %1202 = vmatpush.msra.mxu0 %v1085_v31  ;;  %v1074_v31 = vld [vmem:[#allocation18 + $0x230] sm:$0xff] }
 0x29e   :  { %v671_v26 = vadd.f32 %v2187_v19, %v2185_v15  ;;  %2190 = vpow2.f32 %v629_v16  ;;  %v2189_v32 = vpop.eup %2188  ;;  %931 = vmatpush.msrb.mxu2 %v775_v28  ;;  %v771_v16 = vld [vmem:[#allocation18 + $0x138] sm:$0xff] }
 0x29f   :  { %2192 = vpow2.f32 %v632_v17  ;;  %v689_v29 = vpop.xlane.xlu0 %688  ;;  %v2790_v10 = vpop.permute.xlu2 %719  ;;  %v1082_v17 = vld [vmem:[#allocation18 + $0x270] sm:$0xff]  ;;  %v850_v21 = vunpack.c.l.bf16 %v771_v16  ;;  %v851_v22 = vunpack.c.h.bf16 %v771_v16  ;;  %v763_v28 = vld [vmem:[#allocation18 + $0xf8] sm:$0xff] }
 0x2a0   :  { %2194 = vpow2.f32 %v635_v20  ;;  %v672_v33 = vadd.f32 %v2189_v32, %v671_v26  ;;  %v694_v44 = vmax.f32 %v2774_v58, %v689_v29  ;;  %v1160_v23 = vunpack.c.l.bf16 %v1082_v17  ;;  %v1050_v16 = vld [vmem:[#allocation18 + $0x170] sm:$0xff] }
 0x2a2   :  { %2196 = vrcp.f32 %v672_v33  ;;  %v1153_v33 = vunpack.c.h.bf16 %v1078_v24 }
 0x2a4   :  { %v2191_v34 = vpop.eup %2190 }
 0x2a5   :  { %v2193_v35 = vpop.eup %2192 }
 0x2a6   :  { %v637_v36 = vadd.f32 %v2193_v35, %v2191_v34  ;;  %v2195_v37 = vpop.eup %2194 }
 0x2a7   :  { %v693_v43 = vpop.xlane.xlu0 %692 }
 0x2a8   :  { %v638_v38 = vadd.f32 %v2195_v37, %v637_v36  ;;  %v2197_v45 = vpop.eup %2196  ;;  %v695_v47 = vmax.f32 %v694_v44, %v693_v43  ;;  %v834_v36 = vunpack.c.l.bf16 %v763_v28  ;;  %v1144_v44 = vunpack.c.l.bf16 %v1074_v31 }
 0x2a9   :  { %v674_v51 = vmul.f32 %v2197_v45, %v2185_v15  ;;  %v676_v52 = vmul.f32 %v2197_v45, %v2187_v19  ;;  %v679_v5 = vmul.f32 %v2197_v45, %v2189_v32  ;;  %v767_v19 = vld [vmem:[#allocation18 + $0x118] sm:$0xff]  ;;  %v1152_v32 = vunpack.c.l.bf16 %v1078_v24  ;;  %v1046_v24 = vld [vmem:[#allocation18 + $0x150] sm:$0xff] }
 0x2aa   :  { %2198 = vrcp.f32 %v638_v38  ;;  %v696_v56 = vsub.f32 %v2774_v58, %v695_v47  ;;  %v699_v57 = vsub.f32 %v689_v29, %v695_v47  ;;  %v702_v7 = vsub.f32 %v693_v43, %v695_v47  ;;  %v1070_v38 = vld [vmem:[#allocation18 + $0x210] sm:$0xff] }
 0x2ab   :  { %v675_v63 = vmul.f32 %v674_v51, %v2778_v54  ;;  %v677_v0 = vmul.f32 %v676_v52, %v2780_v55  ;;  %v680_v11 = vmul.f32 %v679_v5, %v2783_v62  ;;  %v842_v29 = vunpack.c.l.bf16 %v767_v19 }
 0x2ac   :  { %v697_v3 = vmul.f32 1.442695, %v696_v56  ;;  %v700_v4 = vmul.f32 1.442695, %v699_v57  ;;  %v703_v13 = vmul.f32 1.442695, %v702_v7  ;;  %v843_v30 = vunpack.c.h.bf16 %v767_v19 }
 0x2ad   :  { %v678_v8 = vadd.f32 %v677_v0, %v675_v63  ;;  %v1145_v45 = vunpack.c.h.bf16 %v1074_v31  ;;  %v1136_v50 = vunpack.c.l.bf16 %v1070_v38  ;;  %v1137_v51 = vunpack.c.h.bf16 %v1070_v38  ;;  %v747_v0 = vld [vmem:[#allocation18 + $0x78] sm:$0xff]  ;;  %v1077_v38 = vld [vmem:[#allocation18 + $0x248] sm:$0xff] }
 0x2ae   :  { %2200 = vpow2.f32 %v697_v3  ;;  %v818_v56 = vunpack.c.l.bf16 %v755_v48  ;;  %v819_v57 = vunpack.c.h.bf16 %v755_v48  ;;  %v1058_v3 = vld [vmem:[#allocation18 + $0x1b0] sm:$0xff]  ;;  %v802_v7 = vunpack.c.l.bf16 %v747_v0  ;;  %v735_v19 = vld [vmem:[#allocation18 + $0x18] sm:$0xff] }
 0x2af   :  { %2202 = vpow2.f32 %v700_v4  ;;  %v681_v14 = vadd.f32 %v680_v11, %v678_v8  ;;  %v803_v8 = vunpack.c.h.bf16 %v747_v0  ;;  %v1112_v11 = vunpack.c.l.bf16 %v1058_v3 }
 0x2b0   :  { %v2199_v53 = vpop.eup %2198  ;;  %2204 = vpow2.f32 %v703_v13  ;;  %v739_v13 = vld [vmem:[#allocation18 + $0x38] sm:$0xff]  ;;  %v1151_v48 = vunpack.c.h.bf16 %v1077_v38 }
 0x2b1   :  { %v640_v59 = vmul.f32 %v2199_v53, %v2191_v34  ;;  %v642_v60 = vmul.f32 %v2199_v53, %v2193_v35  ;;  %v645_v61 = vmul.f32 %v2199_v53, %v2195_v37  ;;  %v724_v26 = vmul.f32 %v2790_v10, %v681_v14  ;;  %v759_v34 = vld [vmem:[#allocation18 + $0xd8] sm:$0xff] }
 0x2b2   :  { %v835_v37 = vunpack.c.h.bf16 %v763_v28  ;;  %v826_v46 = vunpack.c.l.bf16 %v759_v34  ;;  %v827_v47 = vunpack.c.h.bf16 %v759_v34  ;;  %v778_v28 = vunpack.c.l.bf16 %v735_v19 }
 0x2b3   :  { %v641_v1 = vmul.f32 %v640_v59, %v2778_v54  ;;  %v643_v2 = vmul.f32 %v642_v60, %v2780_v55  ;;  %v646_v58 = vmul.f32 %v645_v61, %v2783_v62  ;;  %v725_v43 = vadd.f32 %v724_v26, %v2735_v41  ;;  %v1066_v41 = vld [vmem:[#allocation18 + $0x1f0] sm:$0xff]  ;;  %v751_v59 = vld [vmem:[#allocation18 + $0x98] sm:$0xff] }
 0x2b4   :  { %v2795_v20 = vpop.eup %2200  ;;  %v1062_v60 = vld [vmem:[#allocation18 + $0x1d0] sm:$0xff]  ;;  %v1128_v61 = vunpack.c.l.bf16 %v1066_v41  ;;  %v1129_v63 = vunpack.c.h.bf16 %v1066_v41  ;;  %v1096_v26 = vunpack.c.l.bf16 %v1050_v16  ;;  %v1089_v34 = vunpack.c.h.bf16 %v1046_v24 }
 0x2b5   :  { %v644_v6 = vadd.f32 %v643_v2, %v641_v1  ;;  %v2797_v25 = vpop.eup %2202  ;;  %v1042_v53 = vmul.f32 0.2, %v725_v43  ;;  %vm1041_vm10 = vcmp.ge.f32.partialorder %v725_v43, 0.0  ;;  %v810_v1 = vunpack.c.l.bf16 %v751_v59 }
 0x2b6   :  { %v705_v35 = vadd.f32 %v2797_v25, %v2795_v20  ;;  %v2813_v49 = vpop.eup %2204  ;;  %v811_v2 = vunpack.c.h.bf16 %v751_v59  ;;  %v1120_v5 = vunpack.c.l.bf16 %v1062_v60 }
 0x2b7   :  { %v647_v9 = vadd.f32 %v646_v58, %v644_v6  ;;  %v2820_v4 = vsel %vm1041_vm10, %v725_v43, %v1042_v53  ;;  %v1121_v6 = vunpack.c.h.bf16 %v1062_v60  ;;  %v743_v58 = vld [vmem:[#allocation18 + $0x58] sm:$0xff]  ;;  %v1370_v43 = vld [vmem:[#allocation18 + $0x380] sm:$0xff] }
 0x2b8   :  { %v706_v52 = vadd.f32 %v2813_v49, %v705_v35  ;;  %v794_v14 = vunpack.c.l.bf16 %v743_v58  ;;  %v1374_v35 = vld [vmem:[#allocation18 + $0x3a0] sm:$0xff] }
 0x2b9   :  { %v722_v12 = vmul.f32 %v2790_v10, %v647_v9  ;;  %v1054_v9 = vld [vmem:[#allocation18 + $0x190] sm:$0xff] }
 0x2ba   :  { %2206 = vrcp.f32 %v706_v52  ;;  %v1069_v52 = vld [vmem:[#allocation18 + $0x208] sm:$0xff] }
 0x2bb   :  { %v723_v15 = vadd.f32 %v722_v12, %v2733_v39  ;;  %v1161_v39 = vunpack.c.h.bf16 %v1082_v17  ;;  %v1113_v12 = vunpack.c.h.bf16 %v1058_v3  ;;  %v1104_v17 = vunpack.c.l.bf16 %v1054_v9  ;;  %v1061_v3 = vld [vmem:[#allocation18 + $0x1c8] sm:$0xff] }
 0x2bc   :  { %v1134_v60 = vunpack.c.l.bf16 %v1069_v52 }
 0x2bd   :  { %vm729_vm8 = vcmp.ge.f32.partialorder %v723_v15, 0.0  ;;  %v730_v18 = vmul.f32 0.2, %v723_v15 }
 0x2bf   :  { %v2800_v27 = vsel %vm729_vm8, %v723_v15, %v730_v18  ;;  %v795_v15 = vunpack.c.h.bf16 %v743_v58  ;;  %v1105_v18 = vunpack.c.h.bf16 %v1054_v9  ;;  %v1354_v58 = vld [vmem:[#allocation18 + $0x300] sm:$0xff] }
 0x2c0   :  { %2049 = vmatmul.msk.f32.vlgmr.msrb.gmra.mxu1 %vm852_vm9, %v2800_v27  ;;  %2050 = vmatmul.msk.f32.vlgmr.msra.gmra.mxu2 %vm852_vm9, %v2800_v27 }
 0x2c1   :  { %2053 = vmatmul.msk.f32.vlgmr.msrb.gmra.mxu3 %vm852_vm9, %v2800_v27  ;;  %2054 = vmatmul.msk.f32.vlgmr.msrb.gmra.mxu0 %vm852_vm9, %v2800_v27 }
 0x2c2   :  { %982 = vmatpush.msrb.mxu1 %v850_v21  ;;  %1002 = vmatpush.msra.mxu2 %v851_v22  ;;  %v2207_v21 = vpop.eup %2206  ;;  %v786_v22 = vunpack.c.l.bf16 %v739_v13 }
 0x2c3   :  { %1253 = vmatpush.msrb.mxu3 %v1160_v23  ;;  %1273 = vmatpush.msrb.mxu0 %v1161_v39  ;;  %v787_v23 = vunpack.c.h.bf16 %v739_v13  ;;  %v1097_v39 = vunpack.c.h.bf16 %v1050_v16  ;;  %v708_v31 = vmul.f32 %v2207_v21, %v2795_v20  ;;  %v1350_v13 = vld [vmem:[#allocation18 + $0x2e0] sm:$0xff]  ;;  %v1053_v16 = vld [vmem:[#allocation18 + $0x188] sm:$0xff] }
 0x2c4   :  { %983 = vmatpush.msrb.mxu1 %v842_v29  ;;  %1003 = vmatpush.msra.mxu2 %v843_v30  ;;  %v779_v29 = vunpack.c.h.bf16 %v735_v19  ;;  %v1081_v30 = vld [vmem:[#allocation18 + $0x268] sm:$0xff]  ;;  %v1346_v19 = vld [vmem:[#allocation18 + $0x2c0] sm:$0xff] }
 0x2c5   :  { %1254 = vmatpush.msrb.mxu3 %v1152_v32  ;;  %1274 = vmatpush.msrb.mxu0 %v1153_v33  ;;  %v710_v32 = vmul.f32 %v2207_v21, %v2797_v25  ;;  %v1088_v33 = vunpack.c.l.bf16 %v1046_v24  ;;  %v1450_v25 = vunpack.c.l.bf16 %v1374_v35  ;;  %v1049_v24 = vld [vmem:[#allocation18 + $0x168] sm:$0xff] }
 0x2c6   :  { %984 = vmatpush.msrb.mxu1 %v834_v36  ;;  %1004 = vmatpush.msra.mxu2 %v835_v37  ;;  %v1158_v36 = vunpack.c.l.bf16 %v1081_v30  ;;  %v1159_v37 = vunpack.c.h.bf16 %v1081_v30  ;;  %v1395_v30 = vunpack.c.h.bf16 %v1346_v19 }
 0x2c7   :  { %1255 = vmatpush.msrb.mxu3 %v1144_v44  ;;  %1275 = vmatpush.msrb.mxu0 %v1145_v45  ;;  %v709_v44 = vmul.f32 %v708_v31, %v2778_v54  ;;  %v711_v20 = vmul.f32 %v710_v32, %v2780_v55  ;;  %v1451_v45 = vunpack.c.h.bf16 %v1374_v35  ;;  %v1442_v54 = vunpack.c.l.bf16 %v1370_v43  ;;  %v1045_v31 = vld [vmem:[#allocation18 + $0x148] sm:$0xff] }
 0x2c8   :  { %985 = vmatpush.msrb.mxu1 %v826_v46  ;;  %1005 = vmatpush.msra.mxu2 %v827_v47  ;;  %v1073_v46 = vld [vmem:[#allocation18 + $0x228] sm:$0xff]  ;;  %v1150_v47 = vunpack.c.l.bf16 %v1077_v38  ;;  %v1443_v55 = vunpack.c.h.bf16 %v1370_v43  ;;  %v1094_v32 = vunpack.c.l.bf16 %v1049_v24  ;;  %v1087_v38 = vunpack.c.h.bf16 %v1045_v31  ;;  %v1083_v43 = vld [vmem:[#allocation18 + $0x278] sm:$0xff] }
 0x2c9   :  { %1256 = vmatpush.msrb.mxu3 %v1136_v50  ;;  %1276 = vmatpush.msrb.mxu0 %v1137_v51  ;;  %v1366_v50 = vld [vmem:[#allocation18 + $0x360] sm:$0xff]  ;;  %v713_v51 = vmul.f32 %v2207_v21, %v2813_v49  ;;  %v1142_v41 = vunpack.c.l.bf16 %v1073_v46  ;;  %v1143_v53 = vunpack.c.h.bf16 %v1073_v46  ;;  %v1065_v49 = vld [vmem:[#allocation18 + $0x1e8] sm:$0xff]  ;;  %v1163_v46 = vunpack.c.h.bf16 %v1083_v43 }
 0x2ca   :  { %2051 = vmatmul.msk.f32.vlgmr.msra.gmra.mxu1 %vm852_vm9, %v2800_v27  ;;  %2052 = vmatmul.msk.f32.vlgmr.msrb.gmra.mxu2 %vm852_vm9, %v2800_v27  ;;  %v1435_v59 = vunpack.c.h.bf16 %v1366_v50 }
 0x2cb   :  { %986 = vmatpush.msrb.mxu1 %v818_v56  ;;  %1006 = vmatpush.msra.mxu2 %v819_v57  ;;  %v1362_v56 = vld [vmem:[#allocation18 + $0x340] sm:$0xff]  ;;  %v1434_v57 = vunpack.c.l.bf16 %v1366_v50  ;;  %v714_v0 = vmul.f32 %v713_v51, %v2783_v62  ;;  %v1119_v62 = vunpack.c.h.bf16 %v1061_v3 }
 0x2cc   :  { %2057 = vmatmul.msk.f32.vlgmr.msra.gmra.mxu3 %vm852_vm9, %v2820_v4  ;;  %2058 = vmatmul.msk.f32.vlgmr.msra.gmra.mxu0 %vm852_vm9, %v2820_v4 }
 0x2cd   :  { %1257 = vmatpush.msrb.mxu3 %v1128_v61  ;;  %1277 = vmatpush.msrb.mxu0 %v1129_v63  ;;  %v1135_v61 = vunpack.c.h.bf16 %v1069_v52  ;;  %v1358_v63 = vld [vmem:[#allocation18 + $0x320] sm:$0xff] }
 0x2ce   :  { %987 = vmatpush.msrb.mxu1 %v810_v1  ;;  %1007 = vmatpush.msra.mxu2 %v811_v2  ;;  %v1426_v1 = vunpack.c.l.bf16 %v1362_v56  ;;  %v1427_v2 = vunpack.c.h.bf16 %v1362_v56  ;;  %v1419_v9 = vunpack.c.h.bf16 %v1358_v63 }
 0x2cf   :  { %1258 = vmatpush.msrb.mxu3 %v1120_v5  ;;  %1278 = vmatpush.msrb.mxu0 %v1121_v6  ;;  %v1126_v5 = vunpack.c.l.bf16 %v1065_v49  ;;  %v1127_v6 = vunpack.c.h.bf16 %v1065_v49 }
 0x2d0   :  { %988 = vmatpush.msrb.mxu1 %v802_v7  ;;  %1008 = vmatpush.msra.mxu2 %v803_v8  ;;  %v1418_v8 = vunpack.c.l.bf16 %v1358_v63 }
 0x2d1   :  { %1259 = vmatpush.msrb.mxu3 %v1112_v11  ;;  %1279 = vmatpush.msrb.mxu0 %v1113_v12  ;;  %v1057_v11 = vld [vmem:[#allocation18 + $0x1a8] sm:$0xff]  ;;  %v1118_v12 = vunpack.c.l.bf16 %v1061_v3  ;;  %v1360_v3 = vld [vmem:[#allocation18 + $0x330] sm:$0xff] }
 0x2d2   :  { %989 = vmatpush.msrb.mxu1 %v794_v14  ;;  %1009 = vmatpush.msra.mxu2 %v795_v15  ;;  %v1410_v14 = vunpack.c.l.bf16 %v1354_v58  ;;  %v1411_v15 = vunpack.c.h.bf16 %v1354_v58  ;;  %v1063_v58 = vld [vmem:[#allocation18 + $0x1d8] sm:$0xff] }
 0x2d3   :  { %1260 = vmatpush.msrb.mxu3 %v1104_v17  ;;  %1280 = vmatpush.msrb.mxu0 %v1105_v18  ;;  %v1110_v17 = vunpack.c.l.bf16 %v1057_v11  ;;  %v1111_v18 = vunpack.c.h.bf16 %v1057_v11  ;;  %v1422_v11 = vunpack.c.l.bf16 %v1360_v3 }
 0x2d4   :  { %990 = vmatpush.msrb.mxu1 %v786_v22  ;;  %1010 = vmatpush.msra.mxu2 %v787_v23  ;;  %v1402_v22 = vunpack.c.l.bf16 %v1350_v13  ;;  %v1403_v23 = vunpack.c.h.bf16 %v1350_v13  ;;  %v1122_v13 = vunpack.c.l.bf16 %v1063_v58 }
 0x2d5   :  { %1261 = vmatpush.msrb.mxu3 %v1096_v26  ;;  %1281 = vmatpush.msrb.mxu0 %v1097_v39  ;;  %v1102_v26 = vunpack.c.l.bf16 %v1053_v16  ;;  %v1103_v39 = vunpack.c.h.bf16 %v1053_v16 }
 0x2d6   :  { %991 = vmatpush.msrb.mxu1 %v778_v28  ;;  %1011 = vmatpush.msra.mxu2 %v779_v29  ;;  %v1342_v28 = vld [vmem:[#allocation18 + $0x2a0] sm:$0xff]  ;;  %v1394_v29 = vunpack.c.l.bf16 %v1346_v19 }
 0x2d7   :  { %1262 = vmatpush.msrb.mxu3 %v1088_v33  ;;  %1282 = vmatpush.msrb.mxu0 %v1089_v34  ;;  %v1095_v33 = vunpack.c.h.bf16 %v1049_v24  ;;  %v1386_v35 = vunpack.c.l.bf16 %v1342_v28 }
 0x2d8   :  { %2055 = vmatmul.msk.f32.vlgmr.msrb.gmra.mxu1 %vm852_vm9, %v2800_v27  ;;  %2056 = vmatmul.msk.f32.vlgmr.msra.gmra.mxu2 %vm852_vm9, %v2800_v27  ;;  %v712_v27 = vadd.f32 %v711_v20, %v709_v44 }
 0x2d9   :  { %1213 = vmatpush.msra.mxu1 %v1158_v36  ;;  %1233 = vmatpush.msrb.mxu2 %v1159_v37  ;;  %v1387_v36 = vunpack.c.h.bf16 %v1342_v28  ;;  %v1086_v37 = vunpack.c.l.bf16 %v1045_v31 }
 0x2da   :  { %2061 = vmatmul.msk.f32.vlgmr.msrb.gmra.mxu3 %vm852_vm9, %v2820_v4  ;;  %2062 = vmatmul.msk.f32.vlgmr.msrb.gmra.mxu0 %vm852_vm9, %v2820_v4  ;;  %v715_v7 = vadd.f32 %v714_v0, %v712_v27  ;;  %v1067_v0 = vld [vmem:[#allocation18 + $0x1f8] sm:$0xff] }
 0x2db   :  { %1467 = vmatpush.msra.mxu3 %v1450_v25  ;;  %1487 = vmatpush.msra.mxu0 %v1451_v45  ;;  %v1376_v25 = vld [vmem:[#allocation18 + $0x3b0] sm:$0xff] }
 0x2dc   :  { %1214 = vmatpush.msra.mxu1 %v1150_v47  ;;  %1234 = vmatpush.msrb.mxu2 %v1151_v48  ;;  %v726_v21 = vmul.f32 %v2790_v10, %v715_v7  ;;  %v1338_v10 = vld [vmem:[#allocation18 + $0x280] sm:$0xff]  ;;  %v1079_v47 = vld [vmem:[#allocation18 + $0x258] sm:$0xff]  ;;  %v1372_v48 = vld [vmem:[#allocation18 + $0x390] sm:$0xff]  ;;  %v1454_v50 = vunpack.c.l.bf16 %v1376_v25  ;;  %v1455_v51 = vunpack.c.h.bf16 %v1376_v25  ;;  %v1130_v7 = vunpack.c.l.bf16 %v1067_v0 }
 0x2dd   :  { %1468 = vmatpush.msra.mxu3 %v1442_v54  ;;  %1488 = vmatpush.msra.mxu0 %v1443_v55  ;;  %v1378_v44 = vunpack.c.l.bf16 %v1338_v10  ;;  %v1379_v20 = vunpack.c.h.bf16 %v1338_v10  ;;  %v1075_v54 = vld [vmem:[#allocation18 + $0x238] sm:$0xff]  ;;  %v1154_v55 = vunpack.c.l.bf16 %v1079_v47  ;;  %v1155_v52 = vunpack.c.h.bf16 %v1079_v47  ;;  %v1371_v25 = vld [vmem:[#allocation18 + $0x388] sm:$0xff] }
 0x2de   :  { %1215 = vmatpush.msra.mxu1 %v1142_v41  ;;  %1235 = vmatpush.msrb.mxu2 %v1143_v53  ;;  %v727_v34 = vadd.f32 %v726_v21, %v2737_v42  ;;  %v1162_v42 = vunpack.c.l.bf16 %v1083_v43  ;;  %v1368_v41 = vld [vmem:[#allocation18 + $0x370] sm:$0xff]  ;;  %v1446_v56 = vunpack.c.l.bf16 %v1372_v48  ;;  %v1447_v27 = vunpack.c.h.bf16 %v1372_v48  ;;  %v1375_v43 = vld [vmem:[#allocation18 + $0x3a8] sm:$0xff] }
 0x2df   :  { %1469 = vmatpush.msra.mxu3 %v1434_v57  ;;  %1489 = vmatpush.msra.mxu0 %v1435_v59  ;;  %v1071_v57 = vld [vmem:[#allocation18 + $0x218] sm:$0xff]  ;;  %v1146_v59 = vunpack.c.l.bf16 %v1075_v54  ;;  %v1147_v49 = vunpack.c.h.bf16 %v1075_v54  ;;  %v1439_v63 = vunpack.c.h.bf16 %v1368_v41  ;;  %v1444_v47 = vunpack.c.l.bf16 %v1371_v25 }
 0x2e0   :  { %1216 = vmatpush.msra.mxu1 %v1134_v60  ;;  %1236 = vmatpush.msrb.mxu2 %v1135_v61  ;;  %v1336_v45 = vmul.f32 0.2, %v727_v34  ;;  %vm1335_vm11 = vcmp.ge.f32.partialorder %v727_v34, 0.0  ;;  %v1364_v60 = vld [vmem:[#allocation18 + $0x350] sm:$0xff]  ;;  %v1438_v61 = vunpack.c.l.bf16 %v1368_v41  ;;  %v1445_v48 = vunpack.c.h.bf16 %v1371_v25 }
 0x2e1   :  { %1470 = vmatpush.msra.mxu3 %v1426_v1  ;;  %1490 = vmatpush.msra.mxu0 %v1427_v2  ;;  %v1138_v1 = vunpack.c.l.bf16 %v1071_v57  ;;  %v1139_v2 = vunpack.c.h.bf16 %v1071_v57  ;;  %v1351_v57 = vld [vmem:[#allocation18 + $0x2e8] sm:$0xff]  ;;  %v2522_v25 = vmov 2.0  }
 0x2e2   :  { %1217 = vmatpush.msra.mxu1 %v1126_v5  ;;  %1237 = vmatpush.msrb.mxu2 %v1127_v6  ;;  %v2846_v53 = vsel %vm1335_vm11, %v727_v34, %v1336_v45  ;;  %v1430_v5 = vunpack.c.l.bf16 %v1364_v60  ;;  %v1431_v6 = vunpack.c.h.bf16 %v1364_v60  ;;  %v1340_v34 = vld [vmem:[#allocation18 + $0x290] sm:$0xff]  ;;  %v1452_v45 = vunpack.c.l.bf16 %v1375_v43  ;;  %v1347_v60 = vld [vmem:[#allocation18 + $0x2c8] sm:$0xff] }
 0x2e3   :  { %1471 = vmatpush.msra.mxu3 %v1418_v8  ;;  %1491 = vmatpush.msra.mxu0 %v1419_v9  ;;  %v1131_v8 = vunpack.c.h.bf16 %v1067_v0  ;;  %v1356_v9 = vld [vmem:[#allocation18 + $0x310] sm:$0xff]  ;;  %v1343_v0 = vld [vmem:[#allocation18 + $0x2a8] sm:$0xff]  ;;  %2208 = vrcp.f32 %v2522_v25 }
 0x2e4   :  { %1218 = vmatpush.msra.mxu1 %v1118_v12  ;;  %1238 = vmatpush.msrb.mxu2 %v1119_v62  ;;  %v1423_v12 = vunpack.c.h.bf16 %v1360_v3  ;;  %v1059_v62 = vld [vmem:[#allocation18 + $0x1b8] sm:$0xff]  ;;  %v1414_v16 = vunpack.c.l.bf16 %v1356_v9  ;;  %v1339_v3 = vld [vmem:[#allocation18 + $0x288] sm:$0xff] }
 0x2e5   :  { %1472 = vmatpush.msra.mxu3 %v1410_v14  ;;  %1492 = vmatpush.msra.mxu0 %v1411_v15  ;;  %v1123_v14 = vunpack.c.h.bf16 %v1063_v58  ;;  %v1352_v15 = vld [vmem:[#allocation18 + $0x2f0] sm:$0xff]  ;;  %v1114_v19 = vunpack.c.l.bf16 %v1059_v62  ;;  %v1115_v21 = vunpack.c.h.bf16 %v1059_v62  ;;  %v1377_v58 = vld [vmem:[#allocation18 + $0x3b8] sm:$0xff] }
 0x2e6   :  { %1219 = vmatpush.msra.mxu1 %v1110_v17  ;;  %1239 = vmatpush.msrb.mxu2 %v1111_v18  ;;  %v1415_v17 = vunpack.c.h.bf16 %v1356_v9  ;;  %v1055_v18 = vld [vmem:[#allocation18 + $0x198] sm:$0xff]  ;;  %v1407_v24 = vunpack.c.h.bf16 %v1352_v15 }
 0x2e7   :  { %1473 = vmatpush.msra.mxu3 %v1402_v22  ;;  %1493 = vmatpush.msra.mxu0 %v1403_v23  ;;  %v1348_v22 = vld [vmem:[#allocation18 + $0x2d0] sm:$0xff]  ;;  %v1406_v23 = vunpack.c.l.bf16 %v1352_v15  ;;  %v1107_v28 = vunpack.c.h.bf16 %v1055_v18  ;;  %v1373_v9 = vld [vmem:[#allocation18 + $0x398] sm:$0xff] }
 0x2e8   :  { %1220 = vmatpush.msra.mxu1 %v1102_v26  ;;  %1240 = vmatpush.msrb.mxu2 %v1103_v39  ;;  %v1051_v26 = vld [vmem:[#allocation18 + $0x178] sm:$0xff]  ;;  %v1106_v39 = vunpack.c.l.bf16 %v1055_v18  ;;  %v1399_v31 = vunpack.c.h.bf16 %v1348_v22 }
 0x2e9   :  { %1474 = vmatpush.msra.mxu3 %v1394_v29  ;;  %1494 = vmatpush.msra.mxu0 %v1395_v30  ;;  %v1344_v29 = vld [vmem:[#allocation18 + $0x2b0] sm:$0xff]  ;;  %v1398_v30 = vunpack.c.l.bf16 %v1348_v22  ;;  %v1099_v10 = vunpack.c.h.bf16 %v1051_v26  ;;  %v1369_v62 = vld [vmem:[#allocation18 + $0x378] sm:$0xff] }
 0x2ea   :  { %1221 = vmatpush.msra.mxu1 %v1094_v32  ;;  %1241 = vmatpush.msrb.mxu2 %v1095_v33  ;;  %v1047_v32 = vld [vmem:[#allocation18 + $0x158] sm:$0xff]  ;;  %v1098_v33 = vunpack.c.l.bf16 %v1051_v26 }
 0x2eb   :  { %1475 = vmatpush.msra.mxu3 %v1386_v35  ;;  %1495 = vmatpush.msra.mxu0 %v1387_v36  ;;  %v1390_v35 = vunpack.c.l.bf16 %v1344_v29  ;;  %v1391_v36 = vunpack.c.h.bf16 %v1344_v29  ;;  %v1365_v15 = vld [vmem:[#allocation18 + $0x358] sm:$0xff] }
 0x2ec   :  { %1222 = vmatpush.msra.mxu1 %v1086_v37  ;;  %1242 = vmatpush.msrb.mxu2 %v1087_v38  ;;  %v1090_v37 = vunpack.c.l.bf16 %v1047_v32  ;;  %v1091_v38 = vunpack.c.h.bf16 %v1047_v32  ;;  %v1361_v18 = vld [vmem:[#allocation18 + $0x338] sm:$0xff] }
 0x2ed   :  { %1476 = vmatpush.msra.mxu3 %v1378_v44  ;;  %1496 = vmatpush.msra.mxu0 %v1379_v20  ;;  %v1382_v44 = vunpack.c.l.bf16 %v1340_v34  ;;  %v1383_v20 = vunpack.c.h.bf16 %v1340_v34  ;;  %v1357_v22 = vld [vmem:[#allocation18 + $0x318] sm:$0xff] }
 0x2ee   :  { %2059 = vmatmul.msk.f32.vlgmr.msra.gmra.mxu1 %vm852_vm9, %v2820_v4  ;;  %2060 = vmatmul.msk.f32.vlgmr.msrb.gmra.mxu2 %vm852_vm9, %v2820_v4  ;;  %v1353_v26 = vld [vmem:[#allocation18 + $0x2f8] sm:$0xff] }
 0x2ef   :  { %1293 = vmatpush.msrb.mxu1 %v1162_v42  ;;  %1313 = vmatpush.msra.mxu2 %v1163_v46  ;;  %v1453_v42 = vunpack.c.h.bf16 %v1375_v43  ;;  %v1367_v46 = vld [vmem:[#allocation18 + $0x368] sm:$0xff]  ;;  %v1349_v29 = vld [vmem:[#allocation18 + $0x2d8] sm:$0xff] }
 0x2f0   :  { %2065 = vmatmul.msk.f32.vlgmr.msra.gmra.mxu3 %vm852_vm9, %v2846_v53  ;;  %2066 = vmatmul.msk.f32.vlgmr.msra.gmra.mxu0 %vm852_vm9, %v2846_v53  ;;  %v1437_v54 = vunpack.c.h.bf16 %v1367_v46  ;;  %v1345_v32 = vld [vmem:[#allocation18 + $0x2b8] sm:$0xff] }
 0x2f1   :  { %1547 = vmatpush.msrb.mxu3 %v1454_v50  ;;  %1567 = vmatpush.msrb.mxu0 %v1455_v51  ;;  %v1363_v50 = vld [vmem:[#allocation18 + $0x348] sm:$0xff]  ;;  %v1436_v51 = vunpack.c.l.bf16 %v1367_v46  ;;  %v1341_v34 = vld [vmem:[#allocation18 + $0x298] sm:$0xff] }
 0x2f2   :  { %1294 = vmatpush.msrb.mxu1 %v1154_v55  ;;  %1314 = vmatpush.msra.mxu2 %v1155_v52  ;;  %v1359_v55 = vld [vmem:[#allocation18 + $0x328] sm:$0xff]  ;;  %v1428_v52 = vunpack.c.l.bf16 %v1363_v50  ;;  %v1429_v41 = vunpack.c.h.bf16 %v1363_v50  ;;  %v2209_v50 = vpop.eup %2208 }
 0x2f3   :  { %1548 = vmatpush.msrb.mxu3 %v1446_v56  ;;  %1568 = vmatpush.msrb.mxu0 %v1447_v27  ;;  %v1355_v56 = vld [vmem:[#allocation18 + $0x308] sm:$0xff]  ;;  %v1421_v27 = vunpack.c.h.bf16 %v1359_v55  ;;  %vm1690_vm12 = vweird.f32 %v2209_v50 }
 0x2f4   :  { %1295 = vmatpush.msrb.mxu1 %v1146_v59  ;;  %1315 = vmatpush.msra.mxu2 %v1147_v49  ;;  %v1412_v59 = vunpack.c.l.bf16 %v1355_v56  ;;  %v1413_v49 = vunpack.c.h.bf16 %v1355_v56 }
 0x2f5   :  { %1549 = vmatpush.msrb.mxu3 %v1438_v61  ;;  %1569 = vmatpush.msrb.mxu0 %v1439_v63  ;;  %v1404_v61 = vunpack.c.l.bf16 %v1351_v57  ;;  %v1405_v63 = vunpack.c.h.bf16 %v1351_v57 }
 0x2f6   :  { %1296 = vmatpush.msrb.mxu1 %v1138_v1  ;;  %1316 = vmatpush.msra.mxu2 %v1139_v2  ;;  %v1396_v1 = vunpack.c.l.bf16 %v1347_v60  ;;  %v1397_v2 = vunpack.c.h.bf16 %v1347_v60 }
 0x2f7   :  { %1550 = vmatpush.msrb.mxu3 %v1430_v5  ;;  %1570 = vmatpush.msrb.mxu0 %v1431_v6  ;;  %v1388_v5 = vunpack.c.l.bf16 %v1343_v0  ;;  %v1389_v6 = vunpack.c.h.bf16 %v1343_v0 }
 0x2f8   :  { %1297 = vmatpush.msrb.mxu1 %v1130_v7  ;;  %1317 = vmatpush.msra.mxu2 %v1131_v8  ;;  %v1380_v7 = vunpack.c.l.bf16 %v1339_v3  ;;  %v1381_v8 = vunpack.c.h.bf16 %v1339_v3 }
 0x2f9   :  { %1551 = vmatpush.msrb.mxu3 %v1422_v11  ;;  %1571 = vmatpush.msrb.mxu0 %v1423_v12  ;;  %v1456_v11 = vunpack.c.l.bf16 %v1377_v58  ;;  %v1457_v12 = vunpack.c.h.bf16 %v1377_v58 }
 0x2fa   :  { %1298 = vmatpush.msrb.mxu1 %v1122_v13  ;;  %1318 = vmatpush.msra.mxu2 %v1123_v14  ;;  %v1448_v13 = vunpack.c.l.bf16 %v1373_v9  ;;  %v1449_v14 = vunpack.c.h.bf16 %v1373_v9 }
 0x2fb   :  { %1552 = vmatpush.msrb.mxu3 %v1414_v16  ;;  %1572 = vmatpush.msrb.mxu0 %v1415_v17  ;;  %v1440_v16 = vunpack.c.l.bf16 %v1369_v62  ;;  %v1441_v17 = vunpack.c.h.bf16 %v1369_v62 }
 0x2fc   :  { %1299 = vmatpush.msrb.mxu1 %v1114_v19  ;;  %1319 = vmatpush.msra.mxu2 %v1115_v21  ;;  %v1432_v19 = vunpack.c.l.bf16 %v1365_v15  ;;  %v1433_v21 = vunpack.c.h.bf16 %v1365_v15 }
 0x2fd   :  { %1553 = vmatpush.msrb.mxu3 %v1406_v23  ;;  %1573 = vmatpush.msrb.mxu0 %v1407_v24  ;;  %v1424_v23 = vunpack.c.l.bf16 %v1361_v18  ;;  %v1425_v24 = vunpack.c.h.bf16 %v1361_v18 }
 0x2fe   :  { %1300 = vmatpush.msrb.mxu1 %v1106_v39  ;;  %1320 = vmatpush.msra.mxu2 %v1107_v28  ;;  %v1416_v39 = vunpack.c.l.bf16 %v1357_v22  ;;  %v1417_v28 = vunpack.c.h.bf16 %v1357_v22 }
 0x2ff   :  { %1554 = vmatpush.msrb.mxu3 %v1398_v30  ;;  %1574 = vmatpush.msrb.mxu0 %v1399_v31  ;;  %v1408_v30 = vunpack.c.l.bf16 %v1353_v26  ;;  %v1409_v31 = vunpack.c.h.bf16 %v1353_v26 }
 0x300   :  { %1301 = vmatpush.msrb.mxu1 %v1098_v33  ;;  %1321 = vmatpush.msra.mxu2 %v1099_v10  ;;  %v1400_v33 = vunpack.c.l.bf16 %v1349_v29  ;;  %v1401_v10 = vunpack.c.h.bf16 %v1349_v29 }
 0x301   :  { %1555 = vmatpush.msrb.mxu3 %v1390_v35  ;;  %1575 = vmatpush.msrb.mxu0 %v1391_v36  ;;  %v1392_v35 = vunpack.c.l.bf16 %v1345_v32  ;;  %v1393_v36 = vunpack.c.h.bf16 %v1345_v32 }
 0x302   :  { %1302 = vmatpush.msrb.mxu1 %v1090_v37  ;;  %1322 = vmatpush.msra.mxu2 %v1091_v38  ;;  %v1384_v37 = vunpack.c.l.bf16 %v1341_v34  ;;  %v1385_v38 = vunpack.c.h.bf16 %v1341_v34 }
 0x303   :  { %1556 = vmatpush.msrb.mxu3 %v1382_v44  ;;  %1576 = vmatpush.msrb.mxu0 %v1383_v20 }
 0x304   :  { %2063 = vmatmul.msk.f32.vlgmr.msrb.gmra.mxu1 %vm852_vm9, %v2820_v4  ;;  %2064 = vmatmul.msk.f32.vlgmr.msra.gmra.mxu2 %vm852_vm9, %v2820_v4  ;;  %v1420_v4 = vunpack.c.l.bf16 %v1359_v55 }
 0x305   :  { %1507 = vmatpush.msra.mxu1 %v1452_v45  ;;  %1527 = vmatpush.msrb.mxu2 %v1453_v42  ;;  %v2871_v45 = vld [vmem:[%s3150_s13] sm:$0xff] }
 0x306   :  { %2069 = vmatmul.msk.f32.vlgmr.msrb.gmra.mxu3 %vm852_vm9, %v2846_v53  ;;  %2070 = vmatmul.msk.f32.vlgmr.msrb.gmra.mxu0 %vm852_vm9, %v2846_v53  ;;  %v1018_v46 = vperm.slane %v2871_v45, 1 }
 0x307   :  { %1508 = vmatpush.msra.mxu1 %v1444_v47  ;;  %1528 = vmatpush.msrb.mxu2 %v1445_v48 }
 0x309   :  { %1509 = vmatpush.msra.mxu1 %v1436_v51  ;;  %1529 = vmatpush.msrb.mxu2 %v1437_v54  ;;  %v1686_v54 = vmul.f32 2.0, %v2209_v50 }
 0x30b   :  { %1510 = vmatpush.msra.mxu1 %v1428_v52  ;;  %1530 = vmatpush.msrb.mxu2 %v1429_v41  ;;  %v1017_v52 = vperm.slane %v2871_v45, 0 }
 0x30d   :  { %1511 = vmatpush.msra.mxu1 %v1420_v4  ;;  %1531 = vmatpush.msrb.mxu2 %v1421_v27  ;;  %v1687_v27 = vsub.f32 1.0, %v1686_v54 }
 0x30f   :  { %1512 = vmatpush.msra.mxu1 %v1412_v59  ;;  %1532 = vmatpush.msrb.mxu2 %v1413_v49 }
 0x311   :  { %1513 = vmatpush.msra.mxu1 %v1404_v61  ;;  %1533 = vmatpush.msrb.mxu2 %v1405_v63  ;;  %v1688_v61 = vmul.f32 %v2209_v50, %v1687_v27 }
 0x313   :  { %1514 = vmatpush.msra.mxu1 %v1396_v1  ;;  %1534 = vmatpush.msrb.mxu2 %v1397_v2 }
 0x315   :  { %1515 = vmatpush.msra.mxu1 %v1388_v5  ;;  %1535 = vmatpush.msrb.mxu2 %v1389_v6  ;;  %v1689_v5 = vadd.f32 %v2209_v50, %v1688_v61 }
 0x317   :  { %1516 = vmatpush.msra.mxu1 %v1380_v7  ;;  %1536 = vmatpush.msrb.mxu2 %v1381_v8 }
 0x318   :  { %2067 = vmatmul.msk.f32.vlgmr.msra.gmra.mxu1 %vm852_vm9, %v2846_v53  ;;  %2068 = vmatmul.msk.f32.vlgmr.msrb.gmra.mxu2 %vm852_vm9, %v2846_v53 }
 0x319   :  { %1587 = vmatpush.msrb.mxu1 %v1456_v11  ;;  %1607 = vmatpush.msra.mxu2 %v1457_v12  ;;  %v2877_v11 = vsel %vm1690_vm12, %v2209_v50, %v1689_v5 }
 0x31b   :  { %1588 = vmatpush.msrb.mxu1 %v1448_v13  ;;  %1608 = vmatpush.msra.mxu2 %v1449_v14  ;;  %v1022_v14 = vperm.slane %v2871_v45, 5 }
 0x31d   :  { %1589 = vmatpush.msrb.mxu1 %v1440_v16  ;;  %1609 = vmatpush.msra.mxu2 %v1441_v17 }
 0x31f   :  { %1590 = vmatpush.msrb.mxu1 %v1432_v19  ;;  %1610 = vmatpush.msra.mxu2 %v1433_v21 }
 0x321   :  { %1591 = vmatpush.msrb.mxu1 %v1424_v23  ;;  %1611 = vmatpush.msra.mxu2 %v1425_v24  ;;  %v1021_v23 = vperm.slane %v2871_v45, 4 }
 0x323   :  { %1592 = vmatpush.msrb.mxu1 %v1416_v39  ;;  %1612 = vmatpush.msra.mxu2 %v1417_v28 }
 0x325   :  { %1593 = vmatpush.msrb.mxu1 %v1408_v30  ;;  %1613 = vmatpush.msra.mxu2 %v1409_v31 }
 0x327   :  { %1594 = vmatpush.msrb.mxu1 %v1400_v33  ;;  %1614 = vmatpush.msra.mxu2 %v1401_v10 }
 0x329   :  { %1595 = vmatpush.msrb.mxu1 %v1392_v35  ;;  %1615 = vmatpush.msra.mxu2 %v1393_v36 }
 0x32b   :  { %1596 = vmatpush.msrb.mxu1 %v1384_v37  ;;  %1616 = vmatpush.msra.mxu2 %v1385_v38 }
 0x32c   :  { %2071 = vmatmul.msk.f32.vlgmr.msrb.gmra.mxu1 %vm852_vm9, %v2846_v53  ;;  %2072 = vmatmul.msk.f32.vlgmr.msra.gmra.mxu2 %vm852_vm9, %v2846_v53 }
 0x33d   :  { %v873_v55 = vpop.f32.mrf.mxu1 }
 0x33e   :  { %v973_v43 = vpop.f32.mrf.mxu0  ;;  %v1033_v57 = vadd.f32 %v1017_v52, %v873_v55  ;;  %v1019_v52 = vperm.slane %v2871_v45, 2 }
 0x33f   :  { %v1038_v21 = vadd.f32 %v1022_v14, %v973_v43 }
 0x343   :  { %v893_v47 = vpop.f32.mrf.mxu2 }
 0x344   :  { %v953_v44 = vpop.f32.mrf.mxu3  ;;  %v1034_v51 = vadd.f32 %v1018_v46, %v893_v47 }
 0x345   :  { %v1037_v33 = vadd.f32 %v1021_v23, %v953_v44 }
 0x347   :  { %v913_v2 = vpop.f32.mrf.mxu1 }
 0x349   :  { %v1204_v20 = vpop.f32.mrf.mxu0 }
 0x34a   :  { %v1328_v41 = vadd.f32 %v1204_v20, %v1034_v51 }
 0x34d   :  { %v933_v12 = vpop.f32.mrf.mxu2 }
 0x34f   :  { %v1184_v42 = vpop.f32.mrf.mxu3 }
 0x350   :  { %v1327_v60 = vadd.f32 %v1184_v42, %v1033_v57 }
 0x355   :  { %v2880_v15 = vpop.f32.mrf.mxu1 }
 0x357   :  { %v1284_v48 = vpop.f32.mrf.mxu0 }
 0x358   :  { %v1332_v24 = vadd.f32 %v1284_v48, %v1038_v21 }
 0x35b   :  { %v2886_v26 = vpop.f32.mrf.mxu2 }
 0x35d   :  { %v1264_v53 = vpop.f32.mrf.mxu3 }
 0x35e   :  { %v1331_v37 = vadd.f32 %v1264_v53, %v1037_v33 }
 0x36b   :  { %v1224_v31 = vpop.f32.mrf.mxu1 }
 0x36d   :  { %v1498_v56 = vpop.f32.mrf.mxu0 }
 0x36e   :  { %v1622_v4 = vadd.f32 %v1498_v56, %v1328_v41 }
 0x370   :  { %v1636_v59 = vsel %vm336_vm4, %v1622_v4, 0.0 }
 0x371   :  { %v1637_v49 = vrot.slane %v1636_v59, 4  ;;  %v1244_v47 = vpop.f32.mrf.mxu2 }
 0x373   :  { %v1638_v63 = vadd.f32 %v1637_v49, %v1636_v59  ;;  %v1478_v0 = vpop.f32.mrf.mxu3  ;;  %v1035_v59 = vadd.f32 %v1019_v52, %v913_v2 }
 0x374   :  { %v1621_v1 = vadd.f32 %v1478_v0, %v1327_v60  ;;  %v1020_v0 = vperm.slane %v2871_v45, 3 }
 0x375   :  { %v1639_v3 = vrot.slane %v1638_v63, 2 }
 0x376   :  { %v1629_v6 = vsel %vm336_vm4, %v1621_v1, 0.0 }
 0x377   :  { %v1640_v58 = vadd.f32 %v1639_v3, %v1638_v63  ;;  %v1630_v7 = vrot.slane %v1629_v6, 4 }
 0x379   :  { %v1641_v8 = vrot.slane %v1640_v58, 1  ;;  %v1631_v9 = vadd.f32 %v1630_v7, %v1629_v6 }
 0x37b   :  { %v1642_v62 = vadd.f32 %v1641_v8, %v1640_v58  ;;  %v1632_v13 = vrot.slane %v1631_v9, 2 }
 0x37d   :  { %v1693_v16 = vmul.f32 %v2877_v11, %v1642_v62  ;;  %v1633_v17 = vadd.f32 %v1632_v13, %v1631_v9  ;;  %v1036_v62 = vadd.f32 %v1020_v0, %v933_v12 }
 0x37f   :  { %v2883_v18 = vsub.f32 %v1622_v4, %v1693_v16  ;;  %v1634_v19 = vrot.slane %v1633_v17, 1 }
 0x381   :  { %v1635_v22 = vadd.f32 %v1634_v19, %v1633_v17  ;;  %v1709_v39 = vmul.f32 %v2883_v18, %v2883_v18  ;;  %v2899_v51 = vpop.f32.mrf.mxu1 }
 0x383   :  { %v1692_v28 = vmul.f32 %v2877_v11, %v1635_v22  ;;  %v1578_v29 = vpop.f32.mrf.mxu0  ;;  %v1723_v34 = vsel %vm336_vm4, %v1709_v39, 0.0  ;;  %v1330_v22 = vadd.f32 %v1244_v47, %v1036_v62 }
 0x384   :  { %v1626_v30 = vadd.f32 %v1578_v29, %v1332_v24  ;;  %v1724_v25 = vrot.slane %v1723_v34, 4 }
 0x385   :  { %v2891_v32 = vsub.f32 %v1621_v1, %v1692_v28  ;;  %v1329_v1 = vadd.f32 %v1224_v31, %v1035_v59  ;;  %v1024_v59 = vperm.slane %v2871_v45, 7 }
 0x386   :  { %v1664_v10 = vsel %vm336_vm4, %v1626_v30, 0.0  ;;  %v1725_v41 = vadd.f32 %v1724_v25, %v1723_v34 }
 0x387   :  { %v1708_v35 = vmul.f32 %v2891_v32, %v2891_v32  ;;  %v1665_v36 = vrot.slane %v1664_v10, 4  ;;  %v2903_v61 = vpop.f32.mrf.mxu2 }
 0x388   :  { %v1726_v49 = vrot.slane %v1725_v41, 2 }
 0x389   :  { %v1716_v38 = vsel %vm336_vm4, %v1708_v35, 0.0  ;;  %v1666_v43 = vadd.f32 %v1665_v36, %v1664_v10  ;;  %v1558_v20 = vpop.f32.mrf.mxu3 }
 0x38a   :  { %v1717_v42 = vrot.slane %v1716_v38, 4  ;;  %v1625_v46 = vadd.f32 %v1558_v20, %v1331_v37  ;;  %v1727_v7 = vadd.f32 %v1726_v49, %v1725_v41 }
 0x38b   :  { %v1667_v48 = vrot.slane %v1666_v43, 2 }
 0x38c   :  { %v1657_v44 = vsel %vm336_vm4, %v1625_v46, 0.0  ;;  %v1718_v50 = vadd.f32 %v1717_v42, %v1716_v38  ;;  %v1728_v21 = vrot.slane %v1727_v7, 1 }
 0x38d   :  { %v1668_v54 = vadd.f32 %v1667_v48, %v1666_v43  ;;  %v1658_v55 = vrot.slane %v1657_v44, 4 }
 0x38e   :  { %v1719_v4 = vrot.slane %v1718_v50, 2  ;;  %v1729_v33 = vadd.f32 %v1728_v21, %v1727_v7 }
 0x38f   :  { %v1669_v53 = vrot.slane %v1668_v54, 1  ;;  %v1659_v56 = vadd.f32 %v1658_v55, %v1657_v44  ;;  %v1023_v44 = vperm.slane %v2871_v45, 6 }
 0x390   :  { %v1720_v3 = vadd.f32 %v1719_v4, %v1718_v50 }
 0x391   :  { %v1670_v27 = vadd.f32 %v1669_v53, %v1668_v54  ;;  %v1660_v57 = vrot.slane %v1659_v56, 2 }
 0x392   :  { %v1721_v14 = vrot.slane %v1720_v3, 1 }
 0x393   :  { %v1697_v60 = vmul.f32 %v2877_v11, %v1670_v27  ;;  %v1661_v63 = vadd.f32 %v1660_v57, %v1659_v56  ;;  %v1039_v57 = vadd.f32 %v1023_v44, %v2880_v15  ;;  %v1040_v15 = vadd.f32 %v1024_v59, %v2886_v26 }
 0x395   :  { %v2906_v5 = vsub.f32 %v1626_v30, %v1697_v60  ;;  %v1662_v6 = vrot.slane %v1661_v63, 1  ;;  %v1518_v58 = vpop.f32.mrf.mxu1  ;;  %v1722_v30 = vadd.f32 %v1721_v14, %v1720_v3 }
 0x396   :  { %v1623_v8 = vadd.f32 %v1518_v58, %v1329_v1  ;;  %v1333_v1 = vadd.f32 %v2899_v51, %v1039_v57 }
 0x397   :  { %v1713_v9 = vmul.f32 %v2906_v5, %v2906_v5  ;;  %v1663_v2 = vadd.f32 %v1662_v6, %v1661_v63  ;;  %v1772_v43 = vmul.f32 %v1722_v30, %v2877_v11 }
 0x398   :  { %v1643_v13 = vsel %vm336_vm4, %v1623_v8, 0.0 }
 0x399   :  { %v1751_v16 = vsel %vm336_vm4, %v1713_v9, 0.0  ;;  %v1696_v17 = vmul.f32 %v2877_v11, %v1663_v2  ;;  %v1644_v19 = vrot.slane %v1643_v13, 4  ;;  %v2922_v55 = vadd.f32 1e-05, %v1772_v43 }
 0x39a   :  { %v1752_v23 = vrot.slane %v1751_v16, 4  ;;  %v1334_v2 = vadd.f32 %v2903_v61, %v1040_v15 }
 0x39b   :  { %v2913_v24 = vsub.f32 %v1625_v46, %v1696_v17  ;;  %v1645_v39 = vadd.f32 %v1644_v19, %v1643_v13  ;;  %v1538_v28 = vpop.f32.mrf.mxu2  ;;  %v1773_v46 = vmul.f32 %v1729_v33, %v2877_v11  ;;  %2210 = vrsqrt.f32 %v2922_v55 }
 0x39c   :  { %v1624_v29 = vadd.f32 %v1538_v28, %v1330_v22  ;;  %v1753_v34 = vadd.f32 %v1752_v23, %v1751_v16  ;;  %vm1820_vm15 = vweird.f32 %v2922_v55 }
 0x39d   :  { %v1712_v12 = vmul.f32 %v2913_v24, %v2913_v24  ;;  %v1646_v31 = vrot.slane %v1645_v39, 2  ;;  %v2925_v56 = vadd.f32 1e-05, %v1773_v46 }
 0x39e   :  { %v1650_v10 = vsel %vm336_vm4, %v1624_v29, 0.0  ;;  %v1754_v47 = vrot.slane %v1753_v34, 2 }
 0x39f   :  { %v1744_v35 = vsel %vm336_vm4, %v1712_v12, 0.0  ;;  %v1647_v36 = vadd.f32 %v1646_v31, %v1645_v39  ;;  %v1651_v37 = vrot.slane %v1650_v10, 4  ;;  %2212 = vrsqrt.f32 %v2925_v56 }
 0x3a0   :  { %v1745_v38 = vrot.slane %v1744_v35, 4  ;;  %v1755_v4 = vadd.f32 %v1754_v47, %v1753_v34  ;;  %vm1830_vm0 = vweird.f32 %v2925_v56 }
 0x3a1   :  { %v1648_v20 = vrot.slane %v1647_v36, 1  ;;  %v1652_v42 = vadd.f32 %v1651_v37, %v1650_v10  ;;  %v2941_v14 = vpop.eup %2210 }
 0x3a2   :  { %v1746_v25 = vadd.f32 %v1745_v38, %v1744_v35  ;;  %v1756_v3 = vrot.slane %v1755_v4, 1  ;;  %v1815_v61 = vmul.f32 %v2941_v14, %v2922_v55  ;;  %vm1821_vm13 = vweird.f32 %v2941_v14 }
 0x3a3   :  { %v1649_v48 = vadd.f32 %v1648_v20, %v1647_v36  ;;  %v1653_v54 = vrot.slane %v1652_v42, 2  ;;  %vm3007_vm1 = vmor %vm1820_vm15, %vm1821_vm13 }
 0x3a4   :  { %v1747_v50 = vrot.slane %v1746_v25, 2  ;;  %v1757_v51 = vadd.f32 %v1756_v3, %v1755_v4  ;;  %v1816_v38 = vmul.f32 %v2941_v14, %v1815_v61 }
 0x3a5   :  { %v1694_v52 = vmul.f32 %v2877_v11, %v1649_v48  ;;  %v1654_v53 = vadd.f32 %v1653_v54, %v1652_v42  ;;  %v2947_v26 = vpop.eup %2212 }
 0x3a6   :  { %v1748_v41 = vadd.f32 %v1747_v50, %v1746_v25  ;;  %v1777_v30 = vmul.f32 %v1757_v51, %v2877_v11  ;;  %v1825_v31 = vmul.f32 %v2947_v26, %v2925_v56  ;;  %vm1831_vm14 = vweird.f32 %v2947_v26 }
 0x3a7   :  { %v2927_v27 = vsub.f32 %v1623_v8, %v1694_v52  ;;  %v1655_v49 = vrot.slane %v1654_v53, 1  ;;  %v1817_v52 = vmul.f32 0.5, %v1816_v38  ;;  %vm3022_vm2 = vmor %vm1830_vm0, %vm1831_vm14 }
 0x3a8   :  { %v1749_v60 = vrot.slane %v1748_v41, 1  ;;  %v2963_v25 = vadd.f32 1e-05, %v1777_v30  ;;  %v1826_v47 = vmul.f32 %v2947_v26, %v1825_v31 }
 0x3a9   :  { %v1710_v63 = vmul.f32 %v2927_v27, %v2927_v27  ;;  %v1598_v0 = vpop.f32.mrf.mxu1  ;;  %v1656_v58 = vadd.f32 %v1655_v49, %v1654_v53 }
 0x3aa   :  { %v1627_v45 = vadd.f32 %v1598_v0, %v1333_v1  ;;  %v1750_v8 = vadd.f32 %v1749_v60, %v1748_v41  ;;  %v1827_v59 = vmul.f32 0.5, %v1826_v47  ;;  %v2973_v0 = vld [vmem:[#allocation19] sm:$0xff]  ;;  %v1818_v1 = vsub.f32 1.5, %v1817_v52 }
 0x3ab   :  { %v1730_v6 = vsel %vm336_vm4, %v1710_v63, 0.0  ;;  %v1695_v9 = vmul.f32 %v2877_v11, %v1656_v58  ;;  %vm1870_vm15 = vweird.f32 %v2963_v25 }
 0x3ac   :  { %v1731_v7 = vrot.slane %v1730_v6, 4  ;;  %v1671_v13 = vsel %vm336_vm4, %v1627_v45, 0.0  ;;  %v1776_v23 = vmul.f32 %v1750_v8, %v2877_v11 }
 0x3ad   :  { %v2943_v16 = vsub.f32 %v1624_v29, %v1695_v9  ;;  %v1672_v17 = vrot.slane %v1671_v13, 4  ;;  %v1783_v9 = vperm.slane %v2973_v0, 1 }
 0x3ae   :  { %v1732_v62 = vadd.f32 %v1731_v7, %v1730_v6  ;;  %v2960_v35 = vadd.f32 1e-05, %v1776_v23  ;;  %v1828_v7 = vsub.f32 1.5, %v1827_v59 }
 0x3af   :  { %v1618_v19 = vpop.f32.mrf.mxu2  ;;  %v1711_v28 = vmul.f32 %v2943_v16, %v2943_v16  ;;  %v1673_v29 = vadd.f32 %v1672_v17, %v1671_v13  ;;  %v1782_v17 = vperm.slane %v2973_v0, 0  ;;  %v1799_v56 = vmul.f32 %v1783_v9, %v2883_v18 }
 0x3b0   :  { %v1733_v21 = vrot.slane %v1732_v62, 2  ;;  %v2945_v22 = vadd.f32 %v1618_v19, %v1334_v2  ;;  %2214 = vrsqrt.f32 %v2960_v35  ;;  %v1829_v61 = vmul.f32 %v2947_v26, %v1828_v7  ;;  %v3051_v7 = vld [vmem:[%s3153_s16] sm:$0xff]  ;;  %s2523_s16 = smov 1  }
 0x3b1   :  { %v1737_v10 = vsel %vm336_vm4, %v1711_v28, 0.0  ;;  %v1674_v37 = vrot.slane %v1673_v29, 2  ;;  %2216 = vrsqrt.f32 %v2963_v25  ;;  %vm1860_vm11 = vweird.f32 %v2960_v35 }
 0x3b2   :  { %v1734_v39 = vadd.f32 %v1733_v21, %v1732_v62  ;;  %v1678_v12 = vsel %vm336_vm4, %v2945_v22, 0.0  ;;  %v1738_v36 = vrot.slane %v1737_v10, 4  ;;  %v1833_v38 = vsel %vm3022_vm2, %v2947_v26, %v1829_v61 }
 0x3b3   :  { %v1679_v34 = vrot.slane %v1678_v12, 4  ;;  %v1675_v46 = vadd.f32 %v1674_v37, %v1673_v29  ;;  %v1895_v52 = vmul.f32 %v1833_v38, %v1799_v56  ;;  %v1784_v26 = vperm.slane %v2973_v0, 2 }
 0x3b4   :  { %v1735_v33 = vrot.slane %v1734_v39, 1  ;;  %v1739_v42 = vadd.f32 %v1738_v36, %v1737_v10  ;;  %v1798_v36 = vmul.f32 %v1782_v17, %v2891_v32  ;;  %v1954_v17 = vperm.slane %v3051_v7, 0 }
 0x3b5   :  { %v1680_v20 = vadd.f32 %v1679_v34, %v1678_v12  ;;  %v1676_v54 = vrot.slane %v1675_v46, 1  ;;  %v3026_v34 = vld [vmem:[#allocation21] sm:$0xff] }
 0x3b6   :  { %v1736_v43 = vadd.f32 %v1735_v33, %v1734_v39  ;;  %v1740_v50 = vrot.slane %v1739_v42, 2  ;;  %v2975_v3 = vpop.eup %2214  ;;  %v1906_v61 = vperm.slane %v3026_v34, 2 }
 0x3b7   :  { %v1681_v44 = vrot.slane %v1680_v20, 2  ;;  %v1677_v57 = vadd.f32 %v1676_v54, %v1675_v46  ;;  %v2979_v8 = vpop.eup %2216  ;;  %v1855_v19 = vmul.f32 %v2975_v3, %v2960_v35  ;;  %v1904_v46 = vperm.slane %v3026_v34, 0 }
 0x3b8   :  { %v1774_v48 = vmul.f32 %v1736_v43, %v2877_v11  ;;  %v1741_v4 = vadd.f32 %v1740_v50, %v1739_v42  ;;  %v1865_v39 = vmul.f32 %v2979_v8, %v2963_v25  ;;  %vm1861_vm8 = vweird.f32 %v2975_v3 }
 0x3b9   :  { %v1682_v53 = vadd.f32 %v1681_v44, %v1680_v20  ;;  %v1698_v60 = vmul.f32 %v2877_v11, %v1677_v57  ;;  %v1856_v31 = vmul.f32 %v2975_v3, %v1855_v19  ;;  %v1905_v44 = vperm.slane %v3026_v34, 1  ;;  %vm3065_vm12 = vmor %vm1860_vm11, %vm1861_vm8 }
 0x3ba   :  { %v2968_v41 = vadd.f32 1e-05, %v1774_v48  ;;  %v1742_v49 = vrot.slane %v1741_v4, 1  ;;  %v1866_v43 = vmul.f32 %v2979_v8, %v1865_v39  ;;  %vm1871_vm10 = vweird.f32 %v2979_v8 }
 0x3bb   :  { %v1683_v63 = vrot.slane %v1682_v53, 1  ;;  %v2977_v58 = vsub.f32 %v1627_v45, %v1698_v60  ;;  %v1819_v45 = vmul.f32 %v2941_v14, %v1818_v1  ;;  %v1857_v32 = vmul.f32 0.5, %v1856_v31  ;;  %vm3082_vm0 = vmor %vm1870_vm15, %vm1871_vm10 }
 0x3bc   :  { %2218 = vrsqrt.f32 %v2968_v41  ;;  %v1743_v6 = vadd.f32 %v1742_v49, %v1741_v4  ;;  %v1867_v57 = vmul.f32 0.5, %v1866_v43  ;;  %vm1840_vm5 = vweird.f32 %v2968_v41 }
 0x3bd   :  { %v1684_v15 = vadd.f32 %v1683_v63, %v1682_v53  ;;  %v1714_v62 = vmul.f32 %v2977_v58, %v2977_v58  ;;  %v1823_v12 = vsel %vm3007_vm1, %v2941_v14, %v1819_v45  ;;  %v1787_v14 = vperm.slane %v2973_v0, 5 }
 0x3be   :  { %v1775_v2 = vmul.f32 %v1743_v6, %v2877_v11  ;;  %v1894_v42 = vmul.f32 %v1823_v12, %v1798_v36  ;;  %v1786_v63 = vperm.slane %v2973_v0, 4  ;;  %v1785_v6 = vperm.slane %v2973_v0, 3 }
 0x3bf   :  { %v1699_v13 = vmul.f32 %v2877_v11, %v1684_v15  ;;  %v1758_v28 = vsel %vm336_vm4, %v1714_v62, 0.0  ;;  %v1858_v9 = vsub.f32 1.5, %v1857_v32  ;;  %v1800_v45 = vmul.f32 %v1784_v26, %v2927_v27 }
 0x3c0   :  { %v2997_v23 = vadd.f32 1e-05, %v1775_v2  ;;  %v1759_v33 = vrot.slane %v1758_v28, 4  ;;  %v1920_v60 = vadd.f32 %v1904_v46, %v1894_v42  ;;  %v1801_v38 = vmul.f32 %v1785_v6, %v2943_v16 }
 0x3c1   :  { %v3004_v30 = vsub.f32 %v2945_v22, %v1699_v13  ;;  %v1921_v13 = vadd.f32 %v1905_v44, %v1895_v52  ;;  %v1907_v43 = vperm.slane %v3026_v34, 3  ;;  %v1802_v16 = vmul.f32 %v1786_v63, %v2913_v24 }
 0x3c2   :  { %v2986_v51 = vpop.eup %2218  ;;  %2220 = vrsqrt.f32 %v2997_v23  ;;  %v1760_v18 = vadd.f32 %v1759_v33, %v1758_v28  ;;  %vm1928_vm7 = vcmp.ge.f32.partialorder %v1920_v60, 0.0  ;;  %v1936_v33 = vmul.f32 0.2, %v1920_v60 }
 0x3c3   :  { %v1835_v21 = vmul.f32 %v2986_v51, %v2968_v41  ;;  %v1715_v22 = vmul.f32 %v3004_v30, %v3004_v30  ;;  %vm1841_vm3 = vweird.f32 %v2986_v51  ;;  %vm1850_vm13 = vweird.f32 %v2997_v23 }
 0x3c4   :  { %v1761_v50 = vrot.slane %v1760_v18, 2  ;;  %vm3043_vm6 = vmor %vm1840_vm5, %vm1841_vm3  ;;  %vm1929_vm1 = vcmp.ge.f32.partialorder %v1921_v13, 0.0  ;;  %v1944_v25 = vsel %vm1928_vm7, %v1920_v60, %v1936_v33  ;;  %v1803_v24 = vmul.f32 %v1787_v14, %v2906_v5 }
 0x3c5   :  { %v1836_v55 = vmul.f32 %v2986_v51, %v1835_v21  ;;  %v1765_v20 = vsel %vm336_vm4, %v1715_v22, 0.0  ;;  %v1868_v21 = vsub.f32 1.5, %v1867_v57  ;;  %v1909_v52 = vperm.slane %v3026_v34, 5 }
 0x3c6   :  { %v1766_v48 = vrot.slane %v1765_v20, 4  ;;  %v1762_v49 = vadd.f32 %v1761_v50, %v1760_v18  ;;  %v1955_v50 = vperm.slane %v3051_v7, 1  ;;  %v1956_v57 = vperm.slane %v3051_v7, 2 }
 0x3c7   :  { %v1837_v37 = vmul.f32 0.5, %v1836_v55  ;;  %v1869_v22 = vmul.f32 %v2979_v8, %v1868_v21  ;;  %v1957_v1 = vperm.slane %v3051_v7, 3 }
 0x3c8   :  { %v2221_v54 = vpop.eup %2220  ;;  %v1767_v4 = vadd.f32 %v1766_v48, %v1765_v20  ;;  %v1763_v62 = vrot.slane %v1762_v49, 1 }
 0x3c9   :  { %v1838_v47 = vsub.f32 1.5, %v1837_v37  ;;  %v1845_v59 = vmul.f32 %v2221_v54, %v2997_v23  ;;  %vm1851_vm9 = vweird.f32 %v2221_v54  ;;  %v1937_v23 = vmul.f32 0.2, %v1921_v13 }
 0x3ca   :  { %v1768_v15 = vrot.slane %v1767_v4, 2  ;;  %v1764_v28 = vadd.f32 %v1763_v62, %v1762_v49  ;;  %vm1852_vm14 = vmor %vm1850_vm13, %vm1851_vm9 }
 0x3cb   :  { %v1839_v53 = vmul.f32 %v2986_v51, %v1838_v47  ;;  %v1846_v2 = vmul.f32 %v2221_v54, %v1845_v59  ;;  %v1908_v47 = vperm.slane %v3026_v34, 4 }
 0x3cc   :  { %v1769_v19 = vadd.f32 %v1768_v15, %v1767_v4  ;;  %v1778_v31 = vmul.f32 %v1764_v28, %v2877_v11  ;;  %v1958_v28 = vperm.slane %v3051_v7, 4 }
 0x3cd   :  { %v1843_v41 = vsel %vm3043_vm6, %v2986_v51, %v1839_v53  ;;  %v1847_v39 = vmul.f32 0.5, %v1846_v2  ;;  %v1859_v51 = vmul.f32 %v2975_v3, %v1858_v9 }
 0x3ce   :  { %v1896_v29 = vmul.f32 %v1843_v41, %v1800_v45  ;;  %v1770_v55 = vrot.slane %v1769_v19, 1  ;;  %v3070_v36 = vadd.f32 1e-05, %v1778_v31  ;;  %v1789_v45 = vperm.slane %v2973_v0, 7 }
 0x3cf   :  { %v1848_v12 = vsub.f32 1.5, %v1847_v39  ;;  %v1863_v18 = vsel %vm3065_vm12, %v2975_v3, %v1859_v51  ;;  %v1873_v3 = vsel %vm3082_vm0, %v2979_v8, %v1869_v22  ;;  %v1970_v8 = vmul.f32 %v1954_v17, %v1944_v25 }
 0x3d0   :  { %v1771_v27 = vadd.f32 %v1770_v55, %v1769_v19  ;;  %v1922_v37 = vadd.f32 %v1906_v61, %v1896_v29  ;;  %2222 = vrsqrt.f32 %v3070_v36  ;;  %v1898_v48 = vmul.f32 %v1863_v18, %v1802_v16 }
 0x3d1   :  { %v1849_v10 = vmul.f32 %v2221_v54, %v1848_v12  ;;  %v1899_v4 = vmul.f32 %v1873_v3, %v1803_v24  ;;  %v1978_v2 = vsel %vm336_vm4, %v1970_v8, 0.0  ;;  %vm1880_vm8 = vweird.f32 %v3070_v36 }
 0x3d2   :  { %v1779_v35 = vmul.f32 %v1771_v27, %v2877_v11  ;;  %v1938_v44 = vmul.f32 0.2, %v1922_v37  ;;  %vm1930_vm2 = vcmp.ge.f32.partialorder %v1922_v37, 0.0  ;;  %v1924_v59 = vadd.f32 %v1908_v47, %v1898_v48 }
 0x3d3   :  { %v1853_v20 = vsel %vm1852_vm14, %v2221_v54, %v1849_v10  ;;  %v1945_v54 = vsel %vm1929_vm1, %v1921_v13, %v1937_v23  ;;  %v1925_v15 = vadd.f32 %v1909_v52, %v1899_v4  ;;  %v1788_v13 = vperm.slane %v2973_v0, 6 }
 0x3d4   :  { %v1897_v46 = vmul.f32 %v1853_v20, %v1801_v38  ;;  %v3087_v11 = vadd.f32 1e-05, %v1779_v35  ;;  %v1946_v49 = vsel %vm1930_vm2, %v1922_v37, %v1938_v44  ;;  %v1971_v63 = vmul.f32 %v1955_v50, %v1945_v54 }
 0x3d5   :  { %v1972_v9 = vmul.f32 %v1956_v57, %v1946_v49  ;;  %v1940_v62 = vmul.f32 0.2, %v1924_v59  ;;  %vm1932_vm5 = vcmp.ge.f32.partialorder %v1924_v59, 0.0  ;;  %v1941_v55 = vmul.f32 0.2, %v1925_v15 }
 0x3d6   :  { %v1923_v32 = vadd.f32 %v1907_v43, %v1897_v46  ;;  %2224 = vrsqrt.f32 %v3087_v11  ;;  %v2223_v53 = vpop.eup %2222  ;;  %v1979_v61 = vsel %vm336_vm4, %v1971_v63, 0.0  ;;  %vm1933_vm7 = vcmp.ge.f32.partialorder %v1925_v15, 0.0 }
 0x3d7   :  { %v1875_v60 = vmul.f32 %v2223_v53, %v3070_v36  ;;  %vm1881_vm6 = vweird.f32 %v2223_v53  ;;  %v1980_v29 = vadd.f32 %v1979_v61, %v1978_v2  ;;  %v1981_v12 = vsel %vm336_vm4, %v1972_v9, 0.0 }
 0x3d8   :  { %v1939_v26 = vmul.f32 0.2, %v1923_v32  ;;  %vm1931_vm3 = vcmp.ge.f32.partialorder %v1923_v32, 0.0  ;;  %v1804_v31 = vmul.f32 %v1788_v13, %v2977_v58  ;;  %v1948_v0 = vsel %vm1932_vm5, %v1924_v59, %v1940_v62  ;;  %vm1882_vm9 = vmor %vm1880_vm8, %vm1881_vm6  ;;  %v2181_v59 = vld [vmem:[#allocation4] ss:$0 sm:$0xff] }
 0x3d9   :  { %v1876_v14 = vmul.f32 %v2223_v53, %v1875_v60  ;;  %v1910_v27 = vperm.slane %v3026_v34, 6  ;;  %v1959_v37 = vperm.slane %v3051_v7, 5  ;;  %v1982_v38 = vadd.f32 %v1981_v12, %v1980_v29 }
 0x3da   :  { %v1947_v5 = vsel %vm1931_vm3, %v1923_v32, %v1939_v26  ;;  %vm1890_vm11 = vweird.f32 %v3087_v11  ;;  %v1974_v58 = vmul.f32 %v1958_v28, %v1948_v0  ;;  %v1805_v18 = vmul.f32 %v1789_v45, %v3004_v30 }
 0x3db   :  { %v1877_v17 = vmul.f32 0.5, %v1876_v14  ;;  %v1973_v21 = vmul.f32 %v1957_v1, %v1947_v5  ;;  %v1911_v36 = vperm.slane %v3026_v34, 7  ;;  %v1949_v20 = vsel %vm1933_vm7, %v1925_v15, %v1941_v55 }
 0x3dc   :  { %v2225_v6 = vpop.eup %2224  ;;  %v1960_v25 = vperm.slane %v3051_v7, 6  ;;  %v1975_v47 = vmul.f32 %v1959_v37, %v1949_v20  ;;  %v1985_v48 = vsel %vm336_vm4, %v1974_v58, 0.0  ;;  %v1961_v30 = vperm.slane %v3051_v7, 7 }
 0x3dd   :  { %v1885_v41 = vmul.f32 %v2225_v6, %v3087_v11  ;;  %v1878_v39 = vsub.f32 1.5, %v1877_v17  ;;  %vm1891_vm10 = vweird.f32 %v2225_v6  ;;  %v1983_v56 = vsel %vm336_vm4, %v1973_v21, 0.0 }
 0x3de   :  { %vm1892_vm12 = vmor %vm1890_vm11, %vm1891_vm10  ;;  %v1984_v23 = vadd.f32 %v1983_v56, %v1982_v38  ;;  %v1987_v24 = vsel %vm336_vm4, %v1975_v47, 0.0  ;;  %vm2019_vm0 = vcmask 1024   ;;  %vm2025_vm3 = vcmask 9224  }
 0x3df   :  { %v1886_v19 = vmul.f32 %v2225_v6, %v1885_v41  ;;  %v1879_v33 = vmul.f32 %v2223_v53, %v1878_v39  ;;  %vm2032_vm5 = vcmask 74768   ;;  %vm2034_vm6 = vcmask 123984  }
 0x3e0   :  { %v1986_v44 = vadd.f32 %v1985_v48, %v1984_v23 }
 0x3e1   :  { %v1887_v51 = vmul.f32 0.5, %v1886_v19  ;;  %v1883_v10 = vsel %vm1882_vm9, %v2223_v53, %v1879_v33  ;;  %v2524_v19 = vmov 0.0  }
 0x3e2   :  { %v1900_v43 = vmul.f32 %v1883_v10, %v1804_v31  ;;  %v1988_v52 = vadd.f32 %v1987_v24, %v1986_v44 }
 0x3e3   :  { %v1888_v22 = vsub.f32 1.5, %v1887_v51 }
 0x3e4   :  { %v1926_v42 = vadd.f32 %v1910_v27, %v1900_v43 }
 0x3e5   :  { %v1889_v35 = vmul.f32 %v2225_v6, %v1888_v22 }
 0x3e6   :  { %vm1934_vm13 = vcmp.ge.f32.partialorder %v1926_v42, 0.0  ;;  %v1942_v3 = vmul.f32 0.2, %v1926_v42 }
 0x3e7   :  { %v1893_v16 = vsel %vm1892_vm12, %v2225_v6, %v1889_v35 }
 0x3e8   :  { %v1901_v46 = vmul.f32 %v1893_v16, %v1805_v18  ;;  %v1950_v32 = vsel %vm1934_vm13, %v1926_v42, %v1942_v3 }
 0x3e9   :  { %v1976_v50 = vmul.f32 %v1960_v25, %v1950_v32 }
 0x3ea   :  { %v1927_v11 = vadd.f32 %v1911_v36, %v1901_v46 }
 0x3eb   :  { %v1989_v26 = vsel %vm336_vm4, %v1976_v50, 0.0 }
 0x3ec   :  { %vm1935_vm14 = vcmp.ge.f32.partialorder %v1927_v11, 0.0  ;;  %v1943_v34 = vmul.f32 0.2, %v1927_v11  ;;  %v1990_v8 = vadd.f32 %v1989_v26, %v1988_v52 }
 0x3ee   :  { %v1951_v54 = vsel %vm1935_vm14, %v1927_v11, %v1943_v34 }
 0x3ef   :  { %v1977_v53 = vmul.f32 %v1961_v30, %v1951_v54 }
 0x3f1   :  { %v1991_v4 = vsel %vm336_vm4, %v1977_v53, 0.0 }
 0x3f2   :  { %v1992_v57 = vadd.f32 %v1991_v4, %v1990_v8 }
 0x3f4   :  { %1993 = vadd.xlane.f32.xlu2 %v1992_v57 }
 0x467   :  { %v1994_v49 = vpop.xlane.xlu2 %1993 }
 0x468   :  { %v1999_v60 = vadd.f32 %v2181_v59, %v1994_v49 }
 0x46a   :  { %v2073_v63 = vmul.f32 -1.442695, %v1999_v60  ;;  %2022 = vrot.lane.b32.xlu1 %v1999_v60, %s2523_s16 }
 0x46c   :  { %2226 = vpow2.f32 %v2073_v63 }
 0x472   :  { %v2227_v7 = vpop.eup %2226 }
 0x473   :  { %v2003_v1 = vadd.f32 1.0, %v2227_v7 }
 0x475   :  { %2228 = vrcp.f32 %v2003_v1  ;;  %v2015_v15 = vand.u32 2147483648, %v2003_v1  ;;  %v2013_v41 = vand.u32 2147483647, %v2003_v1  ;;  %vm2009_vm4 = vweird.f32 %v2003_v1 }
 0x477   :  { %v2016_v62 = vor.u32 1.1754944e-38, %v2015_v15  ;;  %vm2014_vm2 = vcmp.eq.f32.partialorder %v2013_v41, 8.507059e+37 }
 0x47b   :  { %v2229_v6 = vpop.eup %2228 }
 0x47c   :  { %v2005_v5 = vmul.f32 %v2229_v6, %v2003_v1  ;;  %vm2010_vm15 = vweird.f32 %v2229_v6 }
 0x47d   :  { %vm2011_vm1 = vmor %vm2009_vm4, %vm2010_vm15 }
 0x47e   :  { %v2006_v14 = vsub.f32 1.0, %v2005_v5 }
 0x480   :  { %v2007_v9 = vmul.f32 %v2229_v6, %v2006_v14 }
 0x482   :  { %v2008_v2 = vadd.f32 %v2229_v6, %v2007_v9 }
 0x484   :  { %v2012_v13 = vsel %vm2011_vm1, %v2229_v6, %v2008_v2 }
 0x485   :  { %v2017_v17 = vsel %vm2014_vm2, %v2016_v62, %v2012_v13 }
 0x486   :  { %2020 = vst.msk [vmem:[%s3154_s18] sm:$0x3] %vm2019_vm0, %v2017_v17 }
 0x4dc   :  { %v2023_v45 = vpop.permute.xlu1 %2022 }
 0x4dd   :  { %2026 = vst.msk [vmem:[%s3154_s18] sm:$0x3] %vm2025_vm3, %v2023_v45 }
 0x4de   :  { %2033 = vst.msk [vmem:[%s3154_s18] sm:$0x3] %vm2032_vm5, %v2674_v40 }
 0x4df   :  { %2035 = vst.msk [vmem:[%s3154_s18] sm:$0x3] %vm2034_vm6, %v2524_v19 }
 0x4e0   :  { %2040 = vsyncpa [#allocation6], 1 }
 0x4e1   :  { %2041 = vsyncpa [#allocation8], 1 }
 0x4e2   :  { %2042 = vsyncpa [#allocation11], 1 }
 0x4e3   :  { %2043 = vsyncpa [#allocation14], 1 }
 0x4e4   :  { %2044 = vsyncpa [#allocation17], 1 }
 0x4e5   :  { %2045 = vsyncpa [#allocation20], 1 }

</bundles_post_ra>
